<compile_context>
chip_gen: v7x
topology: tpu7x:2x2x1
jax: 0.10.0
libtpu: 0.0.40
codegen_flags: <defaults>
</compile_context>

<pallas_src>
import math

import jax
import jax.numpy as jnp
from jax.experimental import pallas as pl
from jax.experimental.pallas import tpu as pltpu


def _block_diag(w, g):
    """(a, b) -> (g*a, g*b) block-diagonal matrix holding g copies of w."""
    a, b = w.shape
    eye = jnp.eye(g, dtype=w.dtype)
    return (eye[:, None, :, None] * w[None, :, None, :]).reshape(g * a, g * b)


def decoupling_kernel(xp_ref, tmp_ref, typ_ref, node_ref,
                      wlin_ref, blin_ref, w1tm_ref, w1ty_ref, w2g_ref, b2_ref,
                      expand_ref, y_ref, gated_ref):
    mxu = wlin_ref.dtype   # bf16 (default) or f32; accumulation is always f32

    # Linear path (packed, lane-dense): (TM_P, G*Cin) @ (G*Cin, G*Cout).
    y = jnp.dot(xp_ref[...].astype(mxu), wlin_ref[...],
                preferred_element_type=jnp.float32) + blin_ref[...]

    # Gate FC1 with the feature concat fused away:
    #   h = time_month @ W1_tm + time_year @ W1_ty + (node-emb part + b1)
    h = jnp.dot(tmp_ref[...].astype(mxu), w1tm_ref[...],
                preferred_element_type=jnp.float32)
    h = h + jnp.dot(typ_ref[...].astype(mxu), w1ty_ref[...],
                    preferred_element_type=jnp.float32)
    h = jnp.maximum(h + node_ref[...], 0.0)

    # FC2: one gate scalar per packed row group -> (TM_P, G), then expanded to
    # (TM_P, G*Cout) lanes with a constant 0/1 matrix (keeps stores 128-lane
    # dense without replicating w2 across Cout).
    g = jax.nn.sigmoid(jnp.dot(h.astype(mxu), w2g_ref[...],
                               preferred_element_type=jnp.float32) + b2_ref[...])
    g_full = jnp.dot(g.astype(mxu), expand_ref[...],
                     preferred_element_type=jnp.float32)

    y_ref[...] = y.astype(y_ref.dtype)
    gated_ref[...] = (y * g_full).astype(gated_ref.dtype)


def prepare_decoupling_constants(params, node_emb_u, node_emb_d, *, tm, g,
                                 mxu_dtype=jnp.bfloat16):
    """Kernel-ready constants: block-diagonal weights + per-tile node/FC1 table.

    Depends only on the parameters / node embeddings and the (tm, g) tiling, so
    callers can build it once per parameter set and pass it to
    decoupling_block(constants=...) — hoisting this construction out of the
    per-call hot path.
    """
    Cin, Cout = params["w_lin"].shape
    H = params["w1"].shape[1]
    N, E = node_emb_u.shape
    T = (params["w1"].shape[0] - 2 * E) // 2
    tm_p = tm // g

    w1 = params["w1"].astype(jnp.float32)
    w1_tm, w1_ty = w1[:T], w1[T:2 * T]
    w1_u, w1_d = w1[2 * T:2 * T + E], w1[2 * T + E:]

    # Node-embedding contribution to FC1 (+ b1) depends only on the node index:
    # a tiny (N, H) table, replicated to one packed tile (tm % N == 0, so the
    # node pattern is identical in every tile).
    node_contrib = (node_emb_u.astype(jnp.float32) @ w1_u
                    + node_emb_d.astype(jnp.float32) @ w1_d
                    + params["b1"].astype(jnp.float32)[0])              # (N, H)
    node_tile = node_contrib[jnp.arange(tm) % N].reshape(tm_p, g * H)   # f32

    return dict(
        node_tile=node_tile,
        wlin=_block_diag(params["w_lin"], g).astype(mxu_dtype),             # (G*Cin, G*Cout)
        blin=jnp.tile(params["b_lin"].reshape(1, Cout),
                      (1, g)).astype(jnp.float32),                          # (1, G*Cout)
        w1tm=_block_diag(w1_tm, g).astype(mxu_dtype),                       # (G*T, G*H)
        w1ty=_block_diag(w1_ty, g).astype(mxu_dtype),                       # (G*T, G*H)
        w2g=_block_diag(params["w2"].reshape(H, 1), g).astype(mxu_dtype),   # (G*H, G)
        b2=jnp.broadcast_to(params["b2"].reshape(1, 1),
                            (1, g)).astype(jnp.float32),                    # (1, G)
        expand=_block_diag(jnp.ones((1, Cout), jnp.float32),
                           g).astype(mxu_dtype),                            # (G, G*Cout)
    )


def decoupling_block(x, node_emb_u, node_emb_d, time_month, time_year, params,
                     *, tm_target=8192, out_dtype=None,
                     mxu_dtype=jnp.bfloat16,
                     vmem_budget_bytes=24 * 1024 * 1024,
                     constants=None):
    B, L, N, Cin = x.shape
    T = time_month.shape[-1]
    E = node_emb_u.shape[-1]
    Cout = params["w_lin"].shape[1]
    H = params["w1"].shape[1]
    out_dtype = out_dtype or x.dtype   # pass jnp.bfloat16 to halve output HBM traffic

    # TODO(synk): the gate is applied to the full sequence length; D2STGNN's
    # trailing-L slice is the identity only because the time features share L.
    assert time_month.shape == (B, L, N, T) and time_year.shape == (B, L, N, T)
    assert node_emb_u.shape == (N, E) and node_emb_d.shape == (N, E)
    assert params["w1"].shape[0] == 2 * T + 2 * E

    # Row-group packing factor: G rows share one 128-lane output row.  If Cout
    # does not divide 128 we fall back to G=1 (correct but lane-sparse — pad
    # Cout to a divisor of 128 for performance).
    G = 128 // Cout if 128 % Cout == 0 else 1

    M = B * L * N
    Mg = -(-M // G) * G                     # pad rows only to a multiple of G (usually == M)

    # --- tile selection ------------------------------------------------------
    # tm must be a multiple of N (tile-invariant node table) and of 8*G
    # (sublane alignment of the packed blocks).
    base = math.lcm(8 * G, N)
    in_it = jnp.dtype(x.dtype).itemsize
    out_it = jnp.dtype(out_dtype).itemsize
    # VMEM bytes per original row: double-buffered row I/O + single-buffered
    # node table + in-flight f32 intermediates (h, y, gate).
    bytes_per_row = (2 * in_it * (Cin + 2 * T)
                     + 2 * 2 * out_it * Cout
                     + 4 * H
                     + 4 * (2 * H + 3 * Cout))
    tm_from_target = max(base, (tm_target // base) * base)
    tm_from_vmem = max(base, (vmem_budget_bytes // bytes_per_row // base) * base)
    tm_from_split = max(base, (-(-Mg // 8) + base - 1) // base * base)   # keep >= ~8 tiles
    tm = min(tm_from_target, tm_from_vmem, tm_from_split)
    TM_P = tm // G
    ntiles = pl.cdiv(Mg // G, TM_P)

    if constants is None:
        constants = prepare_decoupling_constants(
            params, node_emb_u, node_emb_d, tm=tm, g=G, mxu_dtype=mxu_dtype)

    # Packed, lane-dense views of the row inputs.  When Mg == M (the common
    # case) these are pure reshapes of contiguous arrays — no HBM copy pass.
    def packed(a, w):
        a = a.reshape(M, w)
        if Mg != M:
            a = jnp.pad(a, ((0, Mg - M), (0, 0)))
        return a.reshape(Mg // G, G * w)

    xp = packed(x, Cin)
    tmp = packed(time_month, T)
    typ = packed(time_year, T)

    GCin, GT, GCout, GH = G * Cin, G * T, G * Cout, G * H

    const_args = (constants["node_tile"], constants["wlin"], constants["blin"],
                  constants["w1tm"], constants["w1ty"], constants["w2g"],
                  constants["b2"], constants["expand"])
    const_shapes = ((TM_P, GH), (GCin, GCout), (1, GCout), (GT, GH), (GT, GH),
                    (GH, G), (1, G), (G, GCout))

    cost = pl.CostEstimate(
        flops=int(2 * Mg * (Cin * Cout + 2 * T * H + H) + 2 * Mg * Cout),
        transcendentals=int(Mg),
        bytes_accessed=int(sum(a.size * a.dtype.itemsize
                               for a in (xp, tmp, typ) + const_args)
                           + 2 * (Mg // G) * GCout * out_it))

    def run(single_buffer_invariants):
        if single_buffer_invariants:
            # Grid-invariant blocks: single-buffer them (block index never
            # changes, so double-buffering would only waste VMEM).
            inv = lambda s: pl.BlockSpec(s, lambda i: (0, 0),
                                         pipeline_mode=pl.Buffered(1))
        else:
            inv = lambda s: pl.BlockSpec(s, lambda i: (0, 0))
        row = lambda w: pl.BlockSpec((TM_P, w), lambda i: (i, 0))
        return pl.pallas_call(
            decoupling_kernel,
            out_shape=(jax.ShapeDtypeStruct((Mg // G, GCout), out_dtype),
                       jax.ShapeDtypeStruct((Mg // G, GCout), out_dtype)),
            grid=(ntiles,),
            in_specs=[row(GCin), row(GT), row(GT)] + [inv(s) for s in const_shapes],
            out_specs=(row(GCout), row(GCout)),
            compiler_params=pltpu.CompilerParams(
                dimension_semantics=("parallel",),   # megacore sharding on v7x
                # Large row tiles overshoot the 16/32 MiB scoped-VMEM defaults;
                # 48 MiB is safe on every generation (v7x physical = 64 MiB/TC).
                vmem_limit_bytes=48 * 1024 * 1024),
            cost_estimate=cost,
        )(xp, tmp, typ, *const_args)

    try:
        y_p, gated_p = run(True)
    except Exception:
        # pl.Buffered(1) unsupported on this JAX version -> default buffering.
        y_p, gated_p = run(False)

    y = y_p.reshape(Mg, Cout)
    gated = gated_p.reshape(Mg, Cout)
    if Mg != M:
        y, gated = y[:M], gated[:M]
    return y.reshape(B, L, N, Cout), gated.reshape(B, L, N, Cout)


def reference(x, node_emb_u, node_emb_d, time_month, time_year, params):
    y = x @ params["w_lin"] + params["b_lin"][0]
    B, L, N, _ = x.shape
    emb_u = jnp.broadcast_to(node_emb_u[None, None], (B, L) + node_emb_u.shape)
    emb_d = jnp.broadcast_to(node_emb_d[None, None], (B, L) + node_emb_d.shape)
    feat = jnp.concatenate([time_month, time_year, emb_u, emb_d], axis=-1)
    h = jax.nn.relu(feat @ params["w1"] + params["b1"][0])
    g = jax.nn.sigmoid(h @ params["w2"] + params["b2"][0])
    return y, y * g


if __name__ == "__main__":
    # Small shapes: batch=2, seq=8, nodes=4, in_channels=4, out_channels=8,
    # node_emb_dim=8, time_emb_dim=8, hidden_dim=32.
    B, L, N = 2, 8, 4
    Cin, Cout = 4, 8
    node_emb_dim, time_emb_dim, hidden_dim = 8, 8, 32
    F = 2 * node_emb_dim + 2 * time_emb_dim

    key = jax.random.PRNGKey(0)
    keys = jax.random.split(key, 11)

    x = jax.random.normal(keys[0], (B, L, N, Cin), jnp.float32)
    node_emb_u = jax.random.normal(keys[1], (N, node_emb_dim), jnp.float32)
    node_emb_d = jax.random.normal(keys[2], (N, node_emb_dim), jnp.float32)
    time_month = jax.random.normal(keys[3], (B, L, N, time_emb_dim), jnp.float32)
    time_year = jax.random.normal(keys[4], (B, L, N, time_emb_dim), jnp.float32)

    params = {
        "w_lin": jax.random.normal(keys[5], (Cin, Cout), jnp.float32) * 0.1,
        "b_lin": jax.random.normal(keys[6], (1, Cout), jnp.float32) * 0.1,
        "w1": jax.random.normal(keys[7], (F, hidden_dim), jnp.float32) * 0.1,
        "b1": jax.random.normal(keys[8], (1, hidden_dim), jnp.float32) * 0.1,
        "w2": jax.random.normal(keys[9], (hidden_dim, 1), jnp.float32) * 0.1,
        "b2": jax.random.normal(keys[10], (1, 1), jnp.float32) * 0.1,
    }

    y_ref, gated_ref = reference(x, node_emb_u, node_emb_d, time_month,
                                 time_year, params)

    # Default fast path: bf16 MXU operands, f32 accumulation / elementwise.
    y, gated = decoupling_block(x, node_emb_u, node_emb_d, time_month,
                                time_year, params)
    jax.block_until_ready((y, gated))
    assert jnp.allclose(y, y_ref, atol=2e-2, rtol=2e-2)
    assert jnp.allclose(gated, gated_ref, atol=2e-2, rtol=2e-2)

    # Exact path (f32 MXU operands) matches the reference tightly.
    y32, gated32 = decoupling_block(x, node_emb_u, node_emb_d, time_month,
                                    time_year, params, mxu_dtype=jnp.float32)
    jax.block_until_ready((y32, gated32))
    assert jnp.allclose(y32, y_ref, atol=1e-4, rtol=1e-4)
    assert jnp.allclose(gated32, gated_ref, atol=1e-4, rtol=1e-4)

    print("KERNEL_OK")
</pallas_src>

<mosaic_0001>
module attributes {stable_mosaic.version = 11 : i64} {
  func.func @decoupling_kernel(%arg0: i32, %arg1: memref<8x64xf32, #tpu.memory_space<vmem>>, %arg2: memref<8x128xf32, #tpu.memory_space<vmem>>, %arg3: memref<8x128xf32, #tpu.memory_space<vmem>>, %arg4: memref<8x512xf32, #tpu.memory_space<vmem>>, %arg5: memref<64x128xbf16, #tpu.memory_space<vmem>>, %arg6: memref<1x128xf32, #tpu.memory_space<vmem>>, %arg7: memref<128x512xbf16, #tpu.memory_space<vmem>>, %arg8: memref<128x512xbf16, #tpu.memory_space<vmem>>, %arg9: memref<512x16xbf16, #tpu.memory_space<vmem>>, %arg10: memref<1x16xf32, #tpu.memory_space<vmem>>, %arg11: memref<16x128xbf16, #tpu.memory_space<vmem>>, %arg12: memref<8x128xf32, #tpu.memory_space<vmem>>, %arg13: memref<8x128xf32, #tpu.memory_space<vmem>>) attributes {dimension_semantics = [#tpu.dimension_semantics<parallel>], iteration_bounds = array<i64: 1>, scalar_prefetch = 0 : i64, scratch_operands = 0 : i64, tpu.core_type = #tpu.core_type<tc>, window_params = [{transform_indices = @transform_0, window_bounds = array<i64: 8, 64>}, {transform_indices = @transform_1, window_bounds = array<i64: 8, 128>}, {transform_indices = @transform_2, window_bounds = array<i64: 8, 128>}, {pipeline_mode = #tpu.pipeline_mode<synchronous>, transform_indices = @transform_3, window_bounds = array<i64: 8, 512>}, {pipeline_mode = #tpu.pipeline_mode<synchronous>, transform_indices = @transform_4, window_bounds = array<i64: 64, 128>}, {pipeline_mode = #tpu.pipeline_mode<synchronous>, transform_indices = @transform_5, window_bounds = array<i64: 1, 128>}, {pipeline_mode = #tpu.pipeline_mode<synchronous>, transform_indices = @transform_6, window_bounds = array<i64: 128, 512>}, {pipeline_mode = #tpu.pipeline_mode<synchronous>, transform_indices = @transform_7, window_bounds = array<i64: 128, 512>}, {pipeline_mode = #tpu.pipeline_mode<synchronous>, transform_indices = @transform_8, window_bounds = array<i64: 512, 16>}, {pipeline_mode = #tpu.pipeline_mode<synchronous>, transform_indices = @transform_9, window_bounds = array<i64: 1, 16>}, {pipeline_mode = #tpu.pipeline_mode<synchronous>, transform_indices = @transform_10, window_bounds = array<i64: 16, 128>}, {transform_indices = @transform_11, window_bounds = array<i64: 8, 128>}, {transform_indices = @transform_12, window_bounds = array<i64: 8, 128>}]} {
    %c0 = arith.constant 0 : index
    %c0_0 = arith.constant 0 : index
    %0 = vector.load %arg1[%c0, %c0_0] : memref<8x64xf32, #tpu.memory_space<vmem>>, vector<8x64xf32>
    %1 = arith.truncf %0 : vector<8x64xf32> to vector<8x64xbf16>
    %c0_1 = arith.constant 0 : index
    %c0_2 = arith.constant 0 : index
    %2 = vector.load %arg5[%c0_1, %c0_2] : memref<64x128xbf16, #tpu.memory_space<vmem>>, vector<64x128xbf16>
    %cst = arith.constant dense<0.000000e+00> : vector<8x128xf32>
    %3 = tpu.matmul %1, %2, %cst {dimension_numbers = #tpu.dot_dimension_numbers<[1], [0], [0], [1], [0, 0, 1, 1], [], []>} : vector<8x64xbf16>, vector<64x128xbf16>, vector<8x128xf32> -> vector<8x128xf32>
    %c0_3 = arith.constant 0 : index
    %c0_4 = arith.constant 0 : index
    %4 = vector.load %arg6[%c0_3, %c0_4] : memref<1x128xf32, #tpu.memory_space<vmem>>, vector<1x128xf32>
    %5 = vector.broadcast %4 : vector<1x128xf32> to vector<8x128xf32>
    %6 = arith.addf %3, %5 : vector<8x128xf32>
    %c0_5 = arith.constant 0 : index
    %c0_6 = arith.constant 0 : index
    %7 = vector.load %arg2[%c0_5, %c0_6] : memref<8x128xf32, #tpu.memory_space<vmem>>, vector<8x128xf32>
    %8 = arith.truncf %7 : vector<8x128xf32> to vector<8x128xbf16>
    %c0_7 = arith.constant 0 : index
    %c0_8 = arith.constant 0 : index
    %9 = vector.load %arg7[%c0_7, %c0_8] : memref<128x512xbf16, #tpu.memory_space<vmem>>, vector<128x512xbf16>
    %cst_9 = arith.constant dense<0.000000e+00> : vector<8x512xf32>
    %10 = tpu.matmul %8, %9, %cst_9 {dimension_numbers = #tpu.dot_dimension_numbers<[1], [0], [0], [1], [0, 0, 1, 1], [], []>} : vector<8x128xbf16>, vector<128x512xbf16>, vector<8x512xf32> -> vector<8x512xf32>
    %c0_10 = arith.constant 0 : index
    %c0_11 = arith.constant 0 : index
    %11 = vector.load %arg3[%c0_10, %c0_11] : memref<8x128xf32, #tpu.memory_space<vmem>>, vector<8x128xf32>
    %12 = arith.truncf %11 : vector<8x128xf32> to vector<8x128xbf16>
    %c0_12 = arith.constant 0 : index
    %c0_13 = arith.constant 0 : index
    %13 = vector.load %arg8[%c0_12, %c0_13] : memref<128x512xbf16, #tpu.memory_space<vmem>>, vector<128x512xbf16>
    %cst_14 = arith.constant dense<0.000000e+00> : vector<8x512xf32>
    %14 = tpu.matmul %12, %13, %cst_14 {dimension_numbers = #tpu.dot_dimension_numbers<[1], [0], [0], [1], [0, 0, 1, 1], [], []>} : vector<8x128xbf16>, vector<128x512xbf16>, vector<8x512xf32> -> vector<8x512xf32>
    %15 = arith.addf %10, %14 : vector<8x512xf32>
    %c0_15 = arith.constant 0 : index
    %c0_16 = arith.constant 0 : index
    %16 = vector.load %arg4[%c0_15, %c0_16] : memref<8x512xf32, #tpu.memory_space<vmem>>, vector<8x512xf32>
    %17 = arith.addf %15, %16 : vector<8x512xf32>
    %cst_17 = arith.constant 0.000000e+00 : f32
    %18 = vector.broadcast %cst_17 : f32 to vector<8x512xf32>
    %19 = arith.maximumf %17, %18 : vector<8x512xf32>
    %20 = arith.truncf %19 : vector<8x512xf32> to vector<8x512xbf16>
    %c0_18 = arith.constant 0 : index
    %c0_19 = arith.constant 0 : index
    %21 = vector.load %arg9[%c0_18, %c0_19] : memref<512x16xbf16, #tpu.memory_space<vmem>>, vector<512x16xbf16>
    %cst_20 = arith.constant dense<0.000000e+00> : vector<8x16xf32>
    %22 = tpu.matmul %20, %21, %cst_20 {dimension_numbers = #tpu.dot_dimension_numbers<[1], [0], [0], [1], [0, 0, 1, 1], [], []>} : vector<8x512xbf16>, vector<512x16xbf16>, vector<8x16xf32> -> vector<8x16xf32>
    %c0_21 = arith.constant 0 : index
    %c0_22 = arith.constant 0 : index
    %23 = vector.load %arg10[%c0_21, %c0_22] : memref<1x16xf32, #tpu.memory_space<vmem>>, vector<1x16xf32>
    %24 = vector.broadcast %23 : vector<1x16xf32> to vector<8x16xf32>
    %25 = arith.addf %22, %24 : vector<8x16xf32>
    %26 = arith.negf %25 : vector<8x16xf32>
    %27 = math.exp %26 : vector<8x16xf32>
    %cst_23 = arith.constant 1.000000e+00 : f32
    %28 = vector.broadcast %cst_23 : f32 to vector<8x16xf32>
    %29 = arith.addf %28, %27 : vector<8x16xf32>
    %30 = arith.divf %28, %29 : vector<8x16xf32>
    %31 = arith.truncf %30 : vector<8x16xf32> to vector<8x16xbf16>
    %c0_24 = arith.constant 0 : index
    %c0_25 = arith.constant 0 : index
    %32 = vector.load %arg11[%c0_24, %c0_25] : memref<16x128xbf16, #tpu.memory_space<vmem>>, vector<16x128xbf16>
    %cst_26 = arith.constant dense<0.000000e+00> : vector<8x128xf32>
    %33 = tpu.matmul %31, %32, %cst_26 {dimension_numbers = #tpu.dot_dimension_numbers<[1], [0], [0], [1], [0, 0, 1, 1], [], []>} : vector<8x16xbf16>, vector<16x128xbf16>, vector<8x128xf32> -> vector<8x128xf32>
    %c0_27 = arith.constant 0 : index
    %c0_28 = arith.constant 0 : index
    %34 = vector.load %arg12[%c0_27, %c0_28] : memref<8x128xf32, #tpu.memory_space<vmem>>, vector<8x128xf32>
    tpu.vector_store %arg12[%c0_27, %c0_28], %6 {strides = array<i32>} : memref<8x128xf32, #tpu.memory_space<vmem>>, vector<8x128xf32>,
    %35 = arith.mulf %6, %33 : vector<8x128xf32>
    %c0_29 = arith.constant 0 : index
    %c0_30 = arith.constant 0 : index
    %36 = vector.load %arg13[%c0_29, %c0_30] : memref<8x128xf32, #tpu.memory_space<vmem>>, vector<8x128xf32>
    tpu.vector_store %arg13[%c0_29, %c0_30], %35 {strides = array<i32>} : memref<8x128xf32, #tpu.memory_space<vmem>>, vector<8x128xf32>,
    return
  }
  func.func @transform_0(%arg0: i32) -> (i32, i32) {
    %c0_i32 = arith.constant 0 : i32
    %c0_i32_0 = arith.constant 0 : i32
    return %arg0, %c0_i32 : i32, i32
  }
  func.func @transform_1(%arg0: i32) -> (i32, i32) {
    %c0_i32 = arith.constant 0 : i32
    %c0_i32_0 = arith.constant 0 : i32
    return %arg0, %c0_i32 : i32, i32
  }
  func.func @transform_2(%arg0: i32) -> (i32, i32) {
    %c0_i32 = arith.constant 0 : i32
    %c0_i32_0 = arith.constant 0 : i32
    return %arg0, %c0_i32 : i32, i32
  }
  func.func @transform_3(%arg0: i32) -> (i32, i32) {
    %c0_i32 = arith.constant 0 : i32
    %c0_i32_0 = arith.constant 0 : i32
    %c0_i32_1 = arith.constant 0 : i32
    return %c0_i32, %c0_i32_0 : i32, i32
  }
  func.func @transform_4(%arg0: i32) -> (i32, i32) {
    %c0_i32 = arith.constant 0 : i32
    %c0_i32_0 = arith.constant 0 : i32
    %c0_i32_1 = arith.constant 0 : i32
    return %c0_i32, %c0_i32_0 : i32, i32
  }
  func.func @transform_5(%arg0: i32) -> (i32, i32) {
    %c0_i32 = arith.constant 0 : i32
    %c0_i32_0 = arith.constant 0 : i32
    %c0_i32_1 = arith.constant 0 : i32
    return %c0_i32, %c0_i32_0 : i32, i32
  }
  func.func @transform_6(%arg0: i32) -> (i32, i32) {
    %c0_i32 = arith.constant 0 : i32
    %c0_i32_0 = arith.constant 0 : i32
    %c0_i32_1 = arith.constant 0 : i32
    return %c0_i32, %c0_i32_0 : i32, i32
  }
  func.func @transform_7(%arg0: i32) -> (i32, i32) {
    %c0_i32 = arith.constant 0 : i32
    %c0_i32_0 = arith.constant 0 : i32
    %c0_i32_1 = arith.constant 0 : i32
    return %c0_i32, %c0_i32_0 : i32, i32
  }
  func.func @transform_8(%arg0: i32) -> (i32, i32) {
    %c0_i32 = arith.constant 0 : i32
    %c0_i32_0 = arith.constant 0 : i32
    %c0_i32_1 = arith.constant 0 : i32
    return %c0_i32, %c0_i32_0 : i32, i32
  }
  func.func @transform_9(%arg0: i32) -> (i32, i32) {
    %c0_i32 = arith.constant 0 : i32
    %c0_i32_0 = arith.constant 0 : i32
    %c0_i32_1 = arith.constant 0 : i32
    return %c0_i32, %c0_i32_0 : i32, i32
  }
  func.func @transform_10(%arg0: i32) -> (i32, i32) {
    %c0_i32 = arith.constant 0 : i32
    %c0_i32_0 = arith.constant 0 : i32
    %c0_i32_1 = arith.constant 0 : i32
    return %c0_i32, %c0_i32_0 : i32, i32
  }
  func.func @transform_11(%arg0: i32) -> (i32, i32) {
    %c0_i32 = arith.constant 0 : i32
    %c0_i32_0 = arith.constant 0 : i32
    return %arg0, %c0_i32 : i32, i32
  }
  func.func @transform_12(%arg0: i32) -> (i32, i32) {
    %c0_i32 = arith.constant 0 : i32
    %c0_i32_0 = arith.constant 0 : i32
    return %arg0, %c0_i32 : i32, i32
  }
}

module attributes {stable_mosaic.version = 11 : i64} {
  func.func @decoupling_kernel(%arg0: i32, %arg1: memref<8x64xf32, #tpu.memory_space<vmem>>, %arg2: memref<8x128xf32, #tpu.memory_space<vmem>>, %arg3: memref<8x128xf32, #tpu.memory_space<vmem>>, %arg4: memref<8x512xf32, #tpu.memory_space<vmem>>, %arg5: memref<64x128xbf16, #tpu.memory_space<vmem>>, %arg6: memref<1x128xf32, #tpu.memory_space<vmem>>, %arg7: memref<128x512xbf16, #tpu.memory_space<vmem>>, %arg8: memref<128x512xbf16, #tpu.memory_space<vmem>>, %arg9: memref<512x16xbf16, #tpu.memory_space<vmem>>, %arg10: memref<1x16xf32, #tpu.memory_space<vmem>>, %arg11: memref<16x128xbf16, #tpu.memory_space<vmem>>, %arg12: memref<8x128xf32, #tpu.memory_space<vmem>>, %arg13: memref<8x128xf32, #tpu.memory_space<vmem>>) attributes {dimension_semantics = [#tpu.dimension_semantics<parallel>], iteration_bounds = array<i64: 1>, scalar_prefetch = 0 : i64, scratch_operands = 0 : i64, tpu.core_type = #tpu.core_type<tc>, window_params = [{transform_indices = @transform_0, window_bounds = array<i64: 8, 64>}, {transform_indices = @transform_1, window_bounds = array<i64: 8, 128>}, {transform_indices = @transform_2, window_bounds = array<i64: 8, 128>}, {pipeline_mode = #tpu.pipeline_mode<synchronous>, transform_indices = @transform_3, window_bounds = array<i64: 8, 512>}, {pipeline_mode = #tpu.pipeline_mode<synchronous>, transform_indices = @transform_4, window_bounds = array<i64: 64, 128>}, {pipeline_mode = #tpu.pipeline_mode<synchronous>, transform_indices = @transform_5, window_bounds = array<i64: 1, 128>}, {pipeline_mode = #tpu.pipeline_mode<synchronous>, transform_indices = @transform_6, window_bounds = array<i64: 128, 512>}, {pipeline_mode = #tpu.pipeline_mode<synchronous>, transform_indices = @transform_7, window_bounds = array<i64: 128, 512>}, {pipeline_mode = #tpu.pipeline_mode<synchronous>, transform_indices = @transform_8, window_bounds = array<i64: 512, 16>}, {pipeline_mode = #tpu.pipeline_mode<synchronous>, transform_indices = @transform_9, window_bounds = array<i64: 1, 16>}, {pipeline_mode = #tpu.pipeline_mode<synchronous>, transform_indices = @transform_10, window_bounds = array<i64: 16, 128>}, {transform_indices = @transform_11, window_bounds = array<i64: 8, 128>}, {transform_indices = @transform_12, window_bounds = array<i64: 8, 128>}]} {
    %c0 = arith.constant 0 : index
    %c0_0 = arith.constant 0 : index
    %0 = vector.load %arg1[%c0, %c0_0] : memref<8x64xf32, #tpu.memory_space<vmem>>, vector<8x64xf32>
    %1 = arith.truncf %0 : vector<8x64xf32> to vector<8x64xbf16>
    %c0_1 = arith.constant 0 : index
    %c0_2 = arith.constant 0 : index
    %2 = vector.load %arg5[%c0_1, %c0_2] : memref<64x128xbf16, #tpu.memory_space<vmem>>, vector<64x128xbf16>
    %cst = arith.constant dense<0.000000e+00> : vector<8x128xf32>
    %3 = tpu.matmul %1, %2, %cst {dimension_numbers = #tpu.dot_dimension_numbers<[1], [0], [0], [1], [0, 0, 1, 1], [], []>} : vector<8x64xbf16>, vector<64x128xbf16>, vector<8x128xf32> -> vector<8x128xf32>
    %c0_3 = arith.constant 0 : index
    %c0_4 = arith.constant 0 : index
    %4 = vector.load %arg6[%c0_3, %c0_4] : memref<1x128xf32, #tpu.memory_space<vmem>>, vector<1x128xf32>
    %5 = vector.broadcast %4 : vector<1x128xf32> to vector<8x128xf32>
    %6 = arith.addf %3, %5 : vector<8x128xf32>
    %c0_5 = arith.constant 0 : index
    %c0_6 = arith.constant 0 : index
    %7 = vector.load %arg2[%c0_5, %c0_6] : memref<8x128xf32, #tpu.memory_space<vmem>>, vector<8x128xf32>
    %8 = arith.truncf %7 : vector<8x128xf32> to vector<8x128xbf16>
    %c0_7 = arith.constant 0 : index
    %c0_8 = arith.constant 0 : index
    %9 = vector.load %arg7[%c0_7, %c0_8] : memref<128x512xbf16, #tpu.memory_space<vmem>>, vector<128x512xbf16>
    %cst_9 = arith.constant dense<0.000000e+00> : vector<8x512xf32>
    %10 = tpu.matmul %8, %9, %cst_9 {dimension_numbers = #tpu.dot_dimension_numbers<[1], [0], [0], [1], [0, 0, 1, 1], [], []>} : vector<8x128xbf16>, vector<128x512xbf16>, vector<8x512xf32> -> vector<8x512xf32>
    %c0_10 = arith.constant 0 : index
    %c0_11 = arith.constant 0 : index
    %11 = vector.load %arg3[%c0_10, %c0_11] : memref<8x128xf32, #tpu.memory_space<vmem>>, vector<8x128xf32>
    %12 = arith.truncf %11 : vector<8x128xf32> to vector<8x128xbf16>
    %c0_12 = arith.constant 0 : index
    %c0_13 = arith.constant 0 : index
    %13 = vector.load %arg8[%c0_12, %c0_13] : memref<128x512xbf16, #tpu.memory_space<vmem>>, vector<128x512xbf16>
    %cst_14 = arith.constant dense<0.000000e+00> : vector<8x512xf32>
    %14 = tpu.matmul %12, %13, %cst_14 {dimension_numbers = #tpu.dot_dimension_numbers<[1], [0], [0], [1], [0, 0, 1, 1], [], []>} : vector<8x128xbf16>, vector<128x512xbf16>, vector<8x512xf32> -> vector<8x512xf32>
    %15 = arith.addf %10, %14 : vector<8x512xf32>
    %c0_15 = arith.constant 0 : index
    %c0_16 = arith.constant 0 : index
    %16 = vector.load %arg4[%c0_15, %c0_16] : memref<8x512xf32, #tpu.memory_space<vmem>>, vector<8x512xf32>
    %17 = arith.addf %15, %16 : vector<8x512xf32>
    %cst_17 = arith.constant 0.000000e+00 : f32
    %18 = vector.broadcast %cst_17 : f32 to vector<8x512xf32>
    %19 = arith.maximumf %17, %18 : vector<8x512xf32>
    %20 = arith.truncf %19 : vector<8x512xf32> to vector<8x512xbf16>
    %c0_18 = arith.constant 0 : index
    %c0_19 = arith.constant 0 : index
    %21 = vector.load %arg9[%c0_18, %c0_19] : memref<512x16xbf16, #tpu.memory_space<vmem>>, vector<512x16xbf16>
    %cst_20 = arith.constant dense<0.000000e+00> : vector<8x16xf32>
    %22 = tpu.matmul %20, %21, %cst_20 {dimension_numbers = #tpu.dot_dimension_numbers<[1], [0], [0], [1], [0, 0, 1, 1], [], []>} : vector<8x512xbf16>, vector<512x16xbf16>, vector<8x16xf32> -> vector<8x16xf32>
    %c0_21 = arith.constant 0 : index
    %c0_22 = arith.constant 0 : index
    %23 = vector.load %arg10[%c0_21, %c0_22] : memref<1x16xf32, #tpu.memory_space<vmem>>, vector<1x16xf32>
    %24 = vector.broadcast %23 : vector<1x16xf32> to vector<8x16xf32>
    %25 = arith.addf %22, %24 : vector<8x16xf32>
    %26 = arith.negf %25 : vector<8x16xf32>
    %27 = math.exp %26 : vector<8x16xf32>
    %cst_23 = arith.constant 1.000000e+00 : f32
    %28 = vector.broadcast %cst_23 : f32 to vector<8x16xf32>
    %29 = arith.addf %28, %27 : vector<8x16xf32>
    %30 = arith.divf %28, %29 : vector<8x16xf32>
    %31 = arith.truncf %30 : vector<8x16xf32> to vector<8x16xbf16>
    %c0_24 = arith.constant 0 : index
    %c0_25 = arith.constant 0 : index
    %32 = vector.load %arg11[%c0_24, %c0_25] : memref<16x128xbf16, #tpu.memory_space<vmem>>, vector<16x128xbf16>
    %cst_26 = arith.constant dense<0.000000e+00> : vector<8x128xf32>
    %33 = tpu.matmul %31, %32, %cst_26 {dimension_numbers = #tpu.dot_dimension_numbers<[1], [0], [0], [1], [0, 0, 1, 1], [], []>} : vector<8x16xbf16>, vector<16x128xbf16>, vector<8x128xf32> -> vector<8x128xf32>
    %c0_27 = arith.constant 0 : index
    %c0_28 = arith.constant 0 : index
    %34 = vector.load %arg12[%c0_27, %c0_28] : memref<8x128xf32, #tpu.memory_space<vmem>>, vector<8x128xf32>
    tpu.vector_store %arg12[%c0_27, %c0_28], %6 {strides = array<i32>} : memref<8x128xf32, #tpu.memory_space<vmem>>, vector<8x128xf32>,
    %35 = arith.mulf %6, %33 : vector<8x128xf32>
    %c0_29 = arith.constant 0 : index
    %c0_30 = arith.constant 0 : index
    %36 = vector.load %arg13[%c0_29, %c0_30] : memref<8x128xf32, #tpu.memory_space<vmem>>, vector<8x128xf32>
    tpu.vector_store %arg13[%c0_29, %c0_30], %35 {strides = array<i32>} : memref<8x128xf32, #tpu.memory_space<vmem>>, vector<8x128xf32>,
    return
  }
  func.func @transform_0(%arg0: i32) -> (i32, i32) {
    %c0_i32 = arith.constant 0 : i32
    %c0_i32_0 = arith.constant 0 : i32
    return %arg0, %c0_i32 : i32, i32
  }
  func.func @transform_1(%arg0: i32) -> (i32, i32) {
    %c0_i32 = arith.constant 0 : i32
    %c0_i32_0 = arith.constant 0 : i32
    return %arg0, %c0_i32 : i32, i32
  }
  func.func @transform_2(%arg0: i32) -> (i32, i32) {
    %c0_i32 = arith.constant 0 : i32
    %c0_i32_0 = arith.constant 0 : i32
    return %arg0, %c0_i32 : i32, i32
  }
  func.func @transform_3(%arg0: i32) -> (i32, i32) {
    %c0_i32 = arith.constant 0 : i32
    %c0_i32_0 = arith.constant 0 : i32
    %c0_i32_1 = arith.constant 0 : i32
    return %c0_i32, %c0_i32_0 : i32, i32
  }
  func.func @transform_4(%arg0: i32) -> (i32, i32) {
    %c0_i32 = arith.constant 0 : i32
    %c0_i32_0 = arith.constant 0 : i32
    %c0_i32_1 = arith.constant 0 : i32
    return %c0_i32, %c0_i32_0 : i32, i32
  }
  func.func @transform_5(%arg0: i32) -> (i32, i32) {
    %c0_i32 = arith.constant 0 : i32
    %c0_i32_0 = arith.constant 0 : i32
    %c0_i32_1 = arith.constant 0 : i32
    return %c0_i32, %c0_i32_0 : i32, i32
  }
  func.func @transform_6(%arg0: i32) -> (i32, i32) {
    %c0_i32 = arith.constant 0 : i32
    %c0_i32_0 = arith.constant 0 : i32
    %c0_i32_1 = arith.constant 0 : i32
    return %c0_i32, %c0_i32_0 : i32, i32
  }
  func.func @transform_7(%arg0: i32) -> (i32, i32) {
    %c0_i32 = arith.constant 0 : i32
    %c0_i32_0 = arith.constant 0 : i32
    %c0_i32_1 = arith.constant 0 : i32
    return %c0_i32, %c0_i32_0 : i32, i32
  }
  func.func @transform_8(%arg0: i32) -> (i32, i32) {
    %c0_i32 = arith.constant 0 : i32
    %c0_i32_0 = arith.constant 0 : i32
    %c0_i32_1 = arith.constant 0 : i32
    return %c0_i32, %c0_i32_0 : i32, i32
  }
  func.func @transform_9(%arg0: i32) -> (i32, i32) {
    %c0_i32 = arith.constant 0 : i32
    %c0_i32_0 = arith.constant 0 : i32
    %c0_i32_1 = arith.constant 0 : i32
    return %c0_i32, %c0_i32_0 : i32, i32
  }
  func.func @transform_10(%arg0: i32) -> (i32, i32) {
    %c0_i32 = arith.constant 0 : i32
    %c0_i32_0 = arith.constant 0 : i32
    %c0_i32_1 = arith.constant 0 : i32
    return %c0_i32, %c0_i32_0 : i32, i32
  }
  func.func @transform_11(%arg0: i32) -> (i32, i32) {
    %c0_i32 = arith.constant 0 : i32
    %c0_i32_0 = arith.constant 0 : i32
    return %arg0, %c0_i32 : i32, i32
  }
  func.func @transform_12(%arg0: i32) -> (i32, i32) {
    %c0_i32 = arith.constant 0 : i32
    %c0_i32_0 = arith.constant 0 : i32
    return %arg0, %c0_i32 : i32, i32
  }
}

</mosaic_0001>

<bundles_post_ra>
// kernel: tpu_custom_call.1
= control target key start
LH: loop header
LB: loop body
LE: loop exit
PB: predicated region body
PF: predicated region fallthrough
CT: control target
= control target key end

     0   :  { %18 = vsyncpa [#allocation3], 0  ;;  %s1954_s0 = inlined_call_operand.vmem [shape: f32[4,64], index: 0, kind: input, shape index: {}]   ;;  %s1955_s1 = inlined_call_operand.vmem [shape: f32[4,128], index: 1, kind: input, shape index: {}]   ;;  %s1956_s2 = inlined_call_operand.vmem [shape: f32[4,128], index: 2, kind: input, shape index: {}]   ;;  %s1957_s3 = inlined_call_operand.vmem [shape: f32[8,512], index: 3, kind: input, shape index: {}]   ;;  %s1958_s4 = inlined_call_operand.hbm [shape: bf16[64,128], index: 4, kind: input, shape index: {}]   ;;  %s1959_s5 = inlined_call_operand.vmem [shape: f32[1,128], index: 5, kind: input, shape index: {}]   ;;  %s1960_s6 = inlined_call_operand.vmem [shape: bf16[128,512], index: 6, kind: input, shape index: {}]   ;;  %s1961_s7 = inlined_call_operand.hbm [shape: bf16[128,512], index: 7, kind: input, shape index: {}]   ;;  %s1962_s8 = inlined_call_operand.vmem [shape: bf16[512,16], index: 8, kind: input, shape index: {}]   ;;  %s1963_s9 = inlined_call_operand.vmem [shape: f32[1,16], index: 9, kind: input, shape index: {}]   ;;  %s1964_s10 = inlined_call_operand.vmem [shape: bf16[16,128], index: 10, kind: input, shape index: {}]   ;;  %s1965_s11 = inlined_call_operand.hbm [shape: f32[4,128], index: 11, kind: output, shape index: {0}]   ;;  %s1966_s12 = inlined_call_operand.hbm [shape: f32[4,128], index: 12, kind: output, shape index: {1}]  }
   0x1   :  { %19 = vsyncpa [#allocation6], 0 }
   0x2   :  { %20 = vsyncpa [#allocation4], 0 }
   0x3   :  { %21 = vsyncpa [#allocation9], 0  ;;  %s1582_s21 = smov [#allocation2]   ;;  %s1486_s25 = scalar_lea.hbm %s1958_s4, 512 }
   0x4   :  { %s35_s22 = sshll.u32 %s1582_s21, 4  ;;  %p1487_p0 = scmp.ne.s32.totalorder %s1958_s4, %s1486_s25  ;;  %s36_s22 = int_to_ptr.vmem [resolvable:$true] %s35_s22 }
   0x5   :  { %p1490_p1 = scmp.lt.u32.totalorder %s1486_s25, %s1958_s4 }
   0x7   :  { %p1492_p2 = pnand %p1490_p1, %p1487_p0 }
   0x9   :  { %1495 = shalt.err (!%p1492_p2)
}
   0xa   :  { %s1496_s30 = scalar_lea.vmem %s36_s22, 512  ;;  %p1501_p4 = scmp.lt.s32.totalorder %s36_s22, %s36_s22 }
   0xb   :  { %p1497_p3 = scmp.ne.s32.totalorder %s36_s22, %s1496_s30  ;;  %p1502_p5 = scmp.lt.s32.totalorder %s1496_s30, %s1496_s30 }
   0xd   :  { %p1503_p6 = por %p1502_p5, %p1501_p4 }
   0xf   :  { %p1504_p7 = pnand %p1503_p6, %p1497_p3 }
  0x11   :  { %1507 = shalt.err (!%p1504_p7)
}
  0x12   :  { %s1583_s13 = smov 64   ;;  %s1584_s14 = smov 4  }
  0x13   :  { %41 = dma.hbm_to_vmem [thread:$0]  %s1958_s4, 512, %s36_s22, [#allocation3], %s1583_s13, %s1583_s13, %s1584_s14  }
  0x14   :  { %s1585_s17 = smov [#allocation5]   ;;  %s1508_s21 = scalar_lea.hbm %s1961_s7, 4096 }
  0x15   :  { %s51_s18 = sshll.u32 %s1585_s17, 4  ;;  %p1509_p8 = scmp.ne.s32.totalorder %s1961_s7, %s1508_s21  ;;  %s52_s18 = int_to_ptr.vmem [resolvable:$true] %s51_s18 }
  0x16   :  { %p1512_p9 = scmp.lt.u32.totalorder %s1508_s21, %s1961_s7 }
  0x18   :  { %p1514_p10 = pnand %p1512_p9, %p1509_p8 }
  0x1a   :  { %1517 = shalt.err (!%p1514_p10)
}
  0x1b   :  { %s1518_s27 = scalar_lea.vmem %s52_s18, 4096  ;;  %p1523_p12 = scmp.lt.s32.totalorder %s52_s18, %s52_s18 }
  0x1c   :  { %p1519_p11 = scmp.ne.s32.totalorder %s52_s18, %s1518_s27  ;;  %p1524_p13 = scmp.lt.s32.totalorder %s1518_s27, %s1518_s27 }
  0x1e   :  { %p1525_p0 = por %p1524_p13, %p1523_p12 }
  0x20   :  { %p1526_p1 = pnand %p1525_p0, %p1519_p11 }
  0x22   :  { %1529 = shalt.err (!%p1526_p1)
}
  0x23   :  { %s1586_s4 = smov 256   ;;  %s1587_s22 = smov 16  }
  0x24   :  { %57 = dma.hbm_to_vmem [thread:$0]  %s1961_s7, 4096, %s52_s18, [#allocation6], %s1586_s4, %s1586_s4, %s1587_s22  }
  0x25   :  { %1574 = dma.done.wait [#allocation3], 512  }
  0x26   :  { %1575 = vsyncadd [#allocation3], 4294966784 }
  0x27   :  { %1576 = dma.done.wait [#allocation6], 4096  }
  0x28   :  { %1577 = vsyncadd [#allocation6], 4294963200  ;;  %v1588_v0 = vmov 0.0   ;;  %vm1589_vm0 = vmmov 0   ;;  %v1590_v1 = vmov 0   ;;  %v1349_v2 = vld [vmem:[#allocation2] sm:$0xff]  }
  0x29   :  { %1320 = vmatprep.subr.bf16.mxu0 %v1588_v0  ;;  %1328 = vmatprep.mubr.msk.bf16.mxu0 %vm1589_vm0, %v1588_v0  ;;  %v1350_v3 = vld [vmem:[#allocation5 + $0x4] ss:$16 sps:$4 sm:$0xff]   ;;  %v1352_v4 = vld [vmem:[#allocation5] ss:$16 sps:$4 sm:$0xff]   ;;  %v1353_v5 = vld [vmem:[#allocation2 + $0x8] sm:$0xff]   ;;  %vm112_vm1 = vcmask 523264  }
  0x2a   :  { %416 = vmatprep.mubr.bf16.mxu1 %v1590_v1  ;;  %1321 = vmatpush3.bf16.msra.mxu0 %v1349_v2  ;;  %v1354_v6 = vld [vmem:[#allocation5 + $0x24] ss:$16 sps:$4 sm:$0xff]   ;;  %v1356_v7 = vld [vmem:[#allocation5 + $0x20] ss:$16 sps:$4 sm:$0xff]   ;;  %v1361_v12 = vld [vmem:[#allocation2 + $0x18] sm:$0xff]   ;;  %vm1082_vm2 = vcmask 130048  }
  0x2b   :  { %384 = vmatprep.subr.bf16.mxu1 %v1350_v3  ;;  %1322 = vmatprep.subr.bf16.mxu0 %v1588_v0  ;;  %v1357_v8 = vld [vmem:[#allocation2 + $0x10] sm:$0xff]   ;;  %v71_v13 = vld [vmem:[%s1954_s0] sm:$0xff]  ;;  %v1367_v14 = vld [vmem:[#allocation5 + $0xc] ss:$16 sps:$4 sm:$0xff]  }
  0x2c   :  { %385 = vmatpush1.bf16.msra.mxu1 %v1352_v4  ;;  %v1358_v9 = vld [vmem:[#allocation5 + $0x44] ss:$16 sps:$4 sm:$0xff]   ;;  %v1360_v10 = vld [vmem:[#allocation5 + $0x40] ss:$16 sps:$4 sm:$0xff]   ;;  %v72_v16 = vpack.c.bf16 %v71_v13, %v71_v13  ;;  %v1365_v18 = vld [vmem:[#allocation5 + $0x8] ss:$16 sps:$4 sm:$0xff]  }
  0x2d   :  { %386 = vmatprep.subr.bf16.mxu1 %v1354_v6  ;;  %v1362_v11 = vld [vmem:[#allocation5 + $0x64] ss:$16 sps:$4 sm:$0xff]   ;;  %v1364_v15 = vld [vmem:[#allocation5 + $0x60] ss:$16 sps:$4 sm:$0xff]   ;;  %v1373_v19 = vld [vmem:[#allocation5 + $0x2c] ss:$16 sps:$4 sm:$0xff]  }
  0x2e   :  { %1323 = vmatpush3.bf16.msra.mxu0 %v1353_v5  ;;  %v1368_v17 = vld [vmem:[#allocation5 + $0x84] ss:$16 sps:$4 sm:$0xff]   ;;  %v1370_v20 = vld [vmem:[#allocation5 + $0x80] ss:$16 sps:$4 sm:$0xff]   ;;  %v1371_v22 = vld [vmem:[#allocation5 + $0x28] ss:$16 sps:$4 sm:$0xff]  }
  0x2f   :  { %1324 = vmatprep.subr.bf16.mxu0 %v1588_v0  ;;  %v1374_v21 = vld [vmem:[#allocation5 + $0xa4] ss:$16 sps:$4 sm:$0xff]   ;;  %v1379_v23 = vld [vmem:[#allocation5 + $0x4c] ss:$16 sps:$4 sm:$0xff]   ;;  %v1376_v24 = vld [vmem:[#allocation5 + $0xa0] ss:$16 sps:$4 sm:$0xff]  }
  0x30   :  { %387 = vmatpush1.bf16.msra.mxu1 %v1356_v7  ;;  %v1380_v25 = vld [vmem:[#allocation5 + $0xc4] ss:$16 sps:$4 sm:$0xff]   ;;  %v1377_v26 = vld [vmem:[#allocation5 + $0x48] ss:$16 sps:$4 sm:$0xff]   ;;  %v1385_v27 = vld [vmem:[#allocation5 + $0x6c] ss:$16 sps:$4 sm:$0xff]  }
  0x31   :  { %388 = vmatprep.subr.bf16.mxu1 %v1358_v9  ;;  %v1382_v28 = vld [vmem:[#allocation5 + $0xc0] ss:$16 sps:$4 sm:$0xff]   ;;  %v1386_v29 = vld [vmem:[#allocation5 + $0xe4] ss:$16 sps:$4 sm:$0xff]   ;;  %v1383_v30 = vld [vmem:[#allocation5 + $0x68] ss:$16 sps:$4 sm:$0xff]  }
  0x32   :  { %1325 = vmatpush3.bf16.msra.mxu0 %v1357_v8  ;;  %v1391_v31 = vld [vmem:[#allocation5 + $0x8c] ss:$16 sps:$4 sm:$0xff]   ;;  %v1388_v32 = vld [vmem:[#allocation5 + $0xe0] ss:$16 sps:$4 sm:$0xff]   ;;  %v1394_v34 = vld [vmem:[%s1960_s6 + $0x4] ss:$16 sps:$4 sm:$0xff]  }
  0x33   :  { %1326 = vmatprep.subr.bf16.mxu0 %v1588_v0  ;;  %v190_v33 = vld [vmem:[%s1956_s2] sm:$0xff]  ;;  %v1389_v35 = vld [vmem:[#allocation5 + $0x88] ss:$16 sps:$4 sm:$0xff]   ;;  %v1397_v37 = vld [vmem:[#allocation5 + $0xac] ss:$16 sps:$4 sm:$0xff]  }
  0x34   :  { %389 = vmatpush1.bf16.msra.mxu1 %v1360_v10  ;;  %v191_v36 = vpack.c.bf16 %v190_v33, %v190_v33  ;;  %v1392_v38 = vld [vmem:[%s1960_s6] ss:$16 sps:$4 sm:$0xff]   ;;  %v1400_v39 = vld [vmem:[%s1960_s6 + $0x24] ss:$16 sps:$4 sm:$0xff]   ;;  %v1395_v40 = vld [vmem:[#allocation5 + $0xa8] ss:$16 sps:$4 sm:$0xff]  }
  0x35   :  { %390 = vmatprep.subr.bf16.mxu1 %v1362_v11  ;;  %v1403_v41 = vld [vmem:[#allocation5 + $0xcc] ss:$16 sps:$4 sm:$0xff]   ;;  %v1398_v42 = vld [vmem:[%s1960_s6 + $0x20] ss:$16 sps:$4 sm:$0xff]   ;;  %v1406_v43 = vld [vmem:[%s1960_s6 + $0x44] ss:$16 sps:$4 sm:$0xff]  }
  0x36   :  { %1327 = vmatpush3.bf16.msra.mxu0 %v1361_v12  ;;  %v1401_v44 = vld [vmem:[#allocation5 + $0xc8] ss:$16 sps:$4 sm:$0xff]   ;;  %v1409_v45 = vld [vmem:[#allocation5 + $0xec] ss:$16 sps:$4 sm:$0xff]   ;;  %v1404_v46 = vld [vmem:[%s1960_s6 + $0x40] ss:$16 sps:$4 sm:$0xff]  }
  0x37   :  { %425 = vmatprep.subr.bf16.mxu0 %v1367_v14  ;;  %v1412_v47 = vld [vmem:[%s1960_s6 + $0x64] ss:$16 sps:$4 sm:$0xff]   ;;  %v1407_v48 = vld [vmem:[#allocation5 + $0xe8] ss:$16 sps:$4 sm:$0xff]   ;;  %v1415_v49 = vld [vmem:[%s1960_s6 + $0xc] ss:$16 sps:$4 sm:$0xff]  }
  0x38   :  { %391 = vmatpush1.bf16.msra.mxu1 %v1364_v15  ;;  %v1410_v50 = vld [vmem:[%s1960_s6 + $0x60] ss:$16 sps:$4 sm:$0xff]   ;;  %v1418_v51 = vld [vmem:[%s1960_s6 + $0x84] ss:$16 sps:$4 sm:$0xff]   ;;  %v1413_v52 = vld [vmem:[%s1960_s6 + $0x8] ss:$16 sps:$4 sm:$0xff]  }
  0x39   :  { %1329 = vmatmul.mubr.msk.bf16.vlgmr.msra.gmra.mrb[0].mxu0 %vm112_vm1, %v72_v16  ;;  %392 = vmatprep.subr.bf16.mxu1 %v1368_v17  ;;  %v1416_v53 = vld [vmem:[%s1960_s6 + $0x80] ss:$16 sps:$4 sm:$0xff]   ;;  %v1421_v54 = vld [vmem:[%s1960_s6 + $0x2c] ss:$16 sps:$4 sm:$0xff]   ;;  %v1424_v55 = vld [vmem:[%s1960_s6 + $0xa4] ss:$16 sps:$4 sm:$0xff]  }
  0x3a   :  { %426 = vmatpush1.bf16.msra.mxu0 %v1365_v18  ;;  %457 = vmatprep.mubr.bf16.mxu0 %v1590_v1  ;;  %v1419_v56 = vld [vmem:[%s1960_s6 + $0x28] ss:$16 sps:$4 sm:$0xff]   ;;  %v1427_v57 = vld [vmem:[%s1960_s6 + $0x4c] ss:$16 sps:$4 sm:$0xff]   ;;  %v1422_v58 = vld [vmem:[%s1960_s6 + $0xa0] ss:$16 sps:$4 sm:$0xff]  }
  0x3b   :  { %427 = vmatprep.subr.bf16.mxu0 %v1373_v19  ;;  %v1430_v59 = vld [vmem:[%s1960_s6 + $0xc4] ss:$16 sps:$4 sm:$0xff]   ;;  %v1425_v60 = vld [vmem:[%s1960_s6 + $0x48] ss:$16 sps:$4 sm:$0xff]   ;;  %v1433_v61 = vld [vmem:[%s1960_s6 + $0x6c] ss:$16 sps:$4 sm:$0xff]  }
  0x3c   :  { %393 = vmatpush1.bf16.msra.mxu1 %v1370_v20  ;;  %v1428_v62 = vld [vmem:[%s1960_s6 + $0xc0] ss:$16 sps:$4 sm:$0xff]   ;;  %v1436_v63 = vld [vmem:[%s1960_s6 + $0xe4] ss:$16 sps:$4 sm:$0xff]   ;;  %v1439_v2 = vld [vmem:[%s1960_s6 + $0x8c] ss:$16 sps:$4 sm:$0xff]  }
  0x3d   :  { %394 = vmatprep.subr.bf16.mxu1 %v1374_v21  ;;  %v1434_v3 = vld [vmem:[%s1960_s6 + $0xe0] ss:$16 sps:$4 sm:$0xff]   ;;  %v1437_v5 = vld [vmem:[%s1960_s6 + $0x88] ss:$16 sps:$4 sm:$0xff]   ;;  %v1442_v6 = vld [vmem:[%s1960_s6 + $0xac] ss:$16 sps:$4 sm:$0xff]  }
  0x3e   :  { %428 = vmatpush1.bf16.msra.mxu0 %v1371_v22  ;;  %v156_v4 = vld [vmem:[%s1955_s1] sm:$0xff]  ;;  %v1440_v8 = vld [vmem:[%s1960_s6 + $0xa8] ss:$16 sps:$4 sm:$0xff]   ;;  %v1445_v9 = vld [vmem:[%s1960_s6 + $0xcc] ss:$16 sps:$4 sm:$0xff]  }
  0x3f   :  { %429 = vmatprep.subr.bf16.mxu0 %v1379_v23  ;;  %v157_v7 = vpack.c.bf16 %v156_v4, %v156_v4  ;;  %v1443_v10 = vld [vmem:[%s1960_s6 + $0xc8] ss:$16 sps:$4 sm:$0xff]   ;;  %v1448_v11 = vld [vmem:[%s1960_s6 + $0xec] ss:$16 sps:$4 sm:$0xff]   ;;  %v1449_v13 = vld [vmem:[%s1962_s8 + $0x40] sm:$0xff]  }
  0x40   :  { %395 = vmatpush1.bf16.msra.mxu1 %v1376_v24  ;;  %v1446_v12 = vld [vmem:[%s1960_s6 + $0xe8] ss:$16 sps:$4 sm:$0xff]   ;;  %v1450_v14 = vld [vmem:[%s1962_s8] sm:$0xff]   ;;  %v1453_v17 = vld [vmem:[%s1962_s8 + $0x50] sm:$0xff]  }
  0x41   :  { %396 = vmatprep.subr.bf16.mxu1 %v1380_v25  ;;  %v1451_v15 = vld [vmem:[%s1962_s8 + $0x48] sm:$0xff]   ;;  %v1454_v18 = vld [vmem:[%s1962_s8 + $0x10] sm:$0xff]   ;;  %v1455_v19 = vld [vmem:[%s1962_s8 + $0x58] sm:$0xff]  }
  0x42   :  { %430 = vmatpush1.bf16.msra.mxu0 %v1377_v26  ;;  %v1452_v16 = vld [vmem:[%s1962_s8 + $0x8] sm:$0xff]   ;;  %v1457_v20 = vld [vmem:[%s1962_s8 + $0xc0] sm:$0xff]   ;;  %v1456_v23 = vld [vmem:[%s1962_s8 + $0x18] sm:$0xff]  }
  0x43   :  { %431 = vmatprep.subr.bf16.mxu0 %v1385_v27  ;;  %v1459_v21 = vld [vmem:[%s1962_s8 + $0x80] sm:$0xff]   ;;  %v1461_v22 = vld [vmem:[%s1962_s8 + $0xc8] sm:$0xff]   ;;  %v1469_v33 = vld [vmem:[%s1962_s8 + $0xd8] sm:$0xff]  }
  0x44   :  { %397 = vmatpush1.bf16.msra.mxu1 %v1382_v28  ;;  %v1458_v24 = vld [vmem:[%s1962_s8 + $0x60] sm:$0xff]   ;;  %v1463_v25 = vld [vmem:[%s1962_s8 + $0x88] sm:$0xff]  }
  0x45   :  { %398 = vmatprep.subr.bf16.mxu1 %v1386_v29  ;;  %v1460_v26 = vld [vmem:[%s1962_s8 + $0x20] sm:$0xff]   ;;  %v1462_v27 = vld [vmem:[%s1962_s8 + $0x68] sm:$0xff]   ;;  %v1465_v29 = vld [vmem:[%s1962_s8 + $0xd0] sm:$0xff]  }
  0x46   :  { %432 = vmatpush1.bf16.msra.mxu0 %v1383_v30  ;;  %v1464_v28 = vld [vmem:[%s1962_s8 + $0x28] sm:$0xff]   ;;  %v1466_v30 = vld [vmem:[%s1962_s8 + $0x70] sm:$0xff]  }
  0x47   :  { %433 = vmatprep.subr.bf16.mxu0 %v1391_v31  ;;  %v1467_v31 = vld [vmem:[%s1962_s8 + $0x90] sm:$0xff]  }
  0x48   :  { %399 = vmatpush1.bf16.msra.mxu1 %v1388_v32  ;;  %v1468_v32 = vld [vmem:[%s1962_s8 + $0x30] sm:$0xff]  }
  0x49   :  { %626 = vmatprep.subr.bf16.mxu1 %v1394_v34  ;;  %v1470_v34 = vld [vmem:[%s1962_s8 + $0x78] sm:$0xff]  }
  0x4a   :  { %434 = vmatpush1.bf16.msra.mxu0 %v1389_v35  ;;  %v1471_v35 = vld [vmem:[%s1962_s8 + $0x98] sm:$0xff]  }
  0x4b   :  { %417 = vmatmul.mubr.bf16.vlgmr.msra.gmra.mrb[0].mxu1 %v191_v36  ;;  %435 = vmatprep.subr.bf16.mxu0 %v1397_v37  ;;  %v1473_v37 = vld [vmem:[%s1962_s8 + $0xe0] sm:$0xff]  }
  0x4c   :  { %627 = vmatpush1.bf16.msra.mxu1 %v1392_v38  ;;  %658 = vmatprep.mubr.bf16.mxu1 %v1590_v1  ;;  %v1474_v38 = vld [vmem:[%s1962_s8 + $0xa0] sm:$0xff]  }
  0x4d   :  { %628 = vmatprep.subr.bf16.mxu1 %v1400_v39  ;;  %v1475_v39 = vld [vmem:[%s1962_s8 + $0xe8] sm:$0xff]  }
  0x4e   :  { %436 = vmatpush1.bf16.msra.mxu0 %v1395_v40  ;;  %v1476_v40 = vld [vmem:[%s1962_s8 + $0xa8] sm:$0xff]  }
  0x4f   :  { %437 = vmatprep.subr.bf16.mxu0 %v1403_v41  ;;  %v1477_v41 = vld [vmem:[%s1962_s8 + $0xf0] sm:$0xff]  }
  0x50   :  { %629 = vmatpush1.bf16.msra.mxu1 %v1398_v42  ;;  %v1478_v42 = vld [vmem:[%s1962_s8 + $0xb0] sm:$0xff]  }
  0x51   :  { %630 = vmatprep.subr.bf16.mxu1 %v1406_v43  ;;  %v1479_v43 = vld [vmem:[%s1962_s8 + $0xf8] sm:$0xff]  }
  0x52   :  { %438 = vmatpush1.bf16.msra.mxu0 %v1401_v44  ;;  %v1480_v44 = vld [vmem:[%s1962_s8 + $0xb8] sm:$0xff]  }
  0x53   :  { %439 = vmatprep.subr.bf16.mxu0 %v1409_v45  ;;  %v1163_v45 = vld [vmem:[%s1959_s5] ss:$0 sm:$0xff] }
  0x54   :  { %631 = vmatpush1.bf16.msra.mxu1 %v1404_v46 }
  0x55   :  { %632 = vmatprep.subr.bf16.mxu1 %v1412_v47 }
  0x56   :  { %440 = vmatpush1.bf16.msra.mxu0 %v1407_v48 }
  0x57   :  { %667 = vmatprep.subr.bf16.mxu0 %v1415_v49 }
  0x58   :  { %633 = vmatpush1.bf16.msra.mxu1 %v1410_v50 }
  0x59   :  { %458 = vmatmul.mubr.bf16.vlgmr.msra.gmra.mrb[4].mxu0 %v191_v36  ;;  %634 = vmatprep.subr.bf16.mxu1 %v1418_v51  ;;  %v1472_v36 = vld [vmem:[%s1962_s8 + $0x38] sm:$0xff]  }
  0x5a   :  { %668 = vmatpush1.bf16.msra.mxu0 %v1413_v52  ;;  %699 = vmatprep.mubr.bf16.mxu0 %v1590_v1  ;;  %v1431_v1 = vld [vmem:[%s1960_s6 + $0x68] ss:$16 sps:$4 sm:$0xff]  }
  0x5b   :  { %669 = vmatprep.subr.bf16.mxu0 %v1421_v54 }
  0x5c   :  { %635 = vmatpush1.bf16.msra.mxu1 %v1416_v53 }
  0x5d   :  { %636 = vmatprep.subr.bf16.mxu1 %v1424_v55 }
  0x5e   :  { %670 = vmatpush1.bf16.msra.mxu0 %v1419_v56 }
  0x5f   :  { %671 = vmatprep.subr.bf16.mxu0 %v1427_v57 }
  0x60   :  { %637 = vmatpush1.bf16.msra.mxu1 %v1422_v58 }
  0x61   :  { %638 = vmatprep.subr.bf16.mxu1 %v1430_v59 }
  0x62   :  { %672 = vmatpush1.bf16.msra.mxu0 %v1425_v60  ;;  %v708_v60 = vld [vmem:[%s1957_s3] sm:$0xff] }
  0x63   :  { %673 = vmatprep.subr.bf16.mxu0 %v1433_v61 }
  0x64   :  { %639 = vmatpush1.bf16.msra.mxu1 %v1428_v62 }
  0x65   :  { %640 = vmatprep.subr.bf16.mxu1 %v1436_v63  ;;  %v709_v63 = vld [vmem:[%s1957_s3 + $0x8] sm:$0xff] }
  0x66   :  { %674 = vmatpush1.bf16.msra.mxu0 %v1431_v1 }
  0x67   :  { %675 = vmatprep.subr.bf16.mxu0 %v1439_v2 }
  0x68   :  { %641 = vmatpush1.bf16.msra.mxu1 %v1434_v3 }
  0x69   :  { %1274 = vmatprep.subr.bf16.mxu1 %v1449_v13 }
  0x6a   :  { %676 = vmatpush1.bf16.msra.mxu0 %v1437_v5 }
  0x6b   :  { %659 = vmatmul.mubr.bf16.vlgmr.msra.gmra.mrb[4].mxu1 %v157_v7  ;;  %677 = vmatprep.subr.bf16.mxu0 %v1442_v6 }
  0x6c   :  { %1275 = vmatpush3.bf16.msra.mxu1 %v1450_v14  ;;  %v711_v14 = vld [vmem:[%s1957_s3 + $0x18] sm:$0xff] }
  0x6d   :  { %1276 = vmatprep.subr.bf16.mxu1 %v1451_v15 }
  0x6e   :  { %678 = vmatpush1.bf16.msra.mxu0 %v1440_v8 }
  0x6f   :  { %679 = vmatprep.subr.bf16.mxu0 %v1445_v9 }
  0x70   :  { %1277 = vmatpush3.bf16.msra.mxu1 %v1452_v16 }
  0x71   :  { %1278 = vmatprep.subr.bf16.mxu1 %v1453_v17 }
  0x72   :  { %680 = vmatpush1.bf16.msra.mxu0 %v1443_v10 }
  0x73   :  { %681 = vmatprep.subr.bf16.mxu0 %v1448_v11  ;;  %v710_v11 = vld [vmem:[%s1957_s3 + $0x10] sm:$0xff] }
  0x74   :  { %1279 = vmatpush3.bf16.msra.mxu1 %v1454_v18 }
  0x75   :  { %1280 = vmatprep.subr.bf16.mxu1 %v1455_v19 }
  0x76   :  { %682 = vmatpush1.bf16.msra.mxu0 %v1446_v12 }
  0x77   :  { %1296 = vmatprep.subr.bf16.mxu0 %v1457_v20 }
  0x78   :  { %1281 = vmatpush3.bf16.msra.mxu1 %v1456_v23  ;;  %v1481_v23 = vld [vmem:[%s1964_s10] sm:$0xff]  }
  0x79   :  { %700 = vmatmul.mubr.bf16.vlgmr.msra.gmra.mrb[8].mxu0 %v157_v7  ;;  %1282 = vmatprep.subr.bf16.mxu1 %v1458_v24 }
  0x7a   :  { %1297 = vmatpush3.bf16.msra.mxu0 %v1459_v21 }
  0x7b   :  { %1298 = vmatprep.subr.bf16.mxu0 %v1461_v22 }
  0x7c   :  { %1283 = vmatpush3.bf16.msra.mxu1 %v1460_v26 }
  0x7d   :  { %1284 = vmatprep.subr.bf16.mxu1 %v1462_v27 }
  0x7e   :  { %1299 = vmatpush3.bf16.msra.mxu0 %v1463_v25 }
  0x7f   :  { %1300 = vmatprep.subr.bf16.mxu0 %v1465_v29  ;;  %v1233_v29 = vld [vmem:[%s1963_s9] ss:$0 sm:$0xff] }
  0x80   :  { %1285 = vmatpush3.bf16.msra.mxu1 %v1464_v28 }
  0x81   :  { %1286 = vmatprep.subr.bf16.mxu1 %v1466_v30 }
  0x82   :  { %1301 = vmatpush3.bf16.msra.mxu0 %v1467_v31 }
  0x83   :  { %1302 = vmatprep.subr.bf16.mxu0 %v1469_v33 }
  0x84   :  { %1287 = vmatpush3.bf16.msra.mxu1 %v1468_v32 }
  0x85   :  { %1288 = vmatprep.subr.bf16.mxu1 %v1470_v34 }
  0x86   :  { %1303 = vmatpush3.bf16.msra.mxu0 %v1471_v35 }
  0x87   :  { %1304 = vmatprep.subr.bf16.mxu0 %v1473_v37 }
  0x88   :  { %1289 = vmatpush3.bf16.msra.mxu1 %v1472_v36 }
  0x89   :  { %1332 = vmatprep.subr.bf16.mxu1 %v1588_v0 }
  0x8a   :  { %1305 = vmatpush3.bf16.msra.mxu0 %v1474_v38 }
  0x8b   :  { %1306 = vmatprep.subr.bf16.mxu0 %v1475_v39 }
  0x8e   :  { %1307 = vmatpush3.bf16.msra.mxu0 %v1476_v40 }
  0x8f   :  { %1308 = vmatprep.subr.bf16.mxu0 %v1477_v41 }
  0x92   :  { %1309 = vmatpush3.bf16.msra.mxu0 %v1478_v42 }
  0x93   :  { %1310 = vmatprep.subr.bf16.mxu0 %v1479_v43 }
  0x96   :  { %1311 = vmatpush3.bf16.msra.mxu0 %v1480_v44 }
 0x10c   :  { %v150_v46 = vpop.f32.mrb[0].mxu0 }
 0x10d   :  { %v1900_v47 = vadd.f32 %v1163_v45, %v150_v46  ;;  %v1330_v48 = vpop.f32.mrb[1].mxu0 }
 0x10e   :  { %v153_v49 = vpop.f32.mrb[2].mxu0 }
 0x10f   :  { %1126 = vst [vmem:[#allocation7] sm:$0xff] %v1900_v47  ;;  %v1331_v50 = vpop.f32.mrb[3].mxu0 }
 0x11e   :  { %v418_v51 = vpop.f32.mrb[0].mxu1 }
 0x11f   :  { %v420_v52 = vpop.f32.mrb[1].mxu1 }
 0x120   :  { %v422_v53 = vpop.f32.mrb[2].mxu1 }
 0x121   :  { %v423_v54 = vpop.f32.mrb[3].mxu1 }
 0x12c   :  { %v459_v55 = vpop.f32.mrb[4].mxu0 }
 0x12d   :  { %v461_v56 = vpop.f32.mrb[5].mxu0 }
 0x12e   :  { %v463_v57 = vpop.f32.mrb[6].mxu0 }
 0x12f   :  { %v464_v58 = vpop.f32.mrb[7].mxu0 }
 0x13e   :  { %v660_v59 = vpop.f32.mrb[4].mxu1 }
 0x13f   :  { %v661_v61 = vadd.f32 %v660_v59, %v418_v51  ;;  %v662_v62 = vpop.f32.mrb[5].mxu1 }
 0x140   :  { %v663_v1 = vadd.f32 %v662_v62, %v420_v52  ;;  %v664_v2 = vpop.f32.mrb[6].mxu1 }
 0x141   :  { %v712_v3 = vadd.f32 %v708_v60, %v661_v61  ;;  %v665_v4 = vpop.f32.mrb[7].mxu1 }
 0x142   :  { %v713_v5 = vadd.f32 %v709_v63, %v663_v1 }
 0x143   :  { %v716_v6 = vmax.f32 %v712_v3, 0.0 }
 0x144   :  { %v717_v7 = vmax.f32 %v713_v5, 0.0 }
 0x145   :  { %v720_v9 = vpack.c.bf16 %v716_v6, %v716_v6 }
 0x146   :  { %v721_v8 = vpack.c.bf16 %v717_v7, %v717_v7 }
 0x148   :  { %1019 = vmatprep.mubr.bf16.mxu1 %v721_v8 }
 0x149   :  { %1020 = vmatmul.mubr.bf16.vlgmr.msra.gmra.mrb[8].mxu1 %v720_v9 }
 0x14a   :  { %1334 = vmatprep.mubr.msk.bf16.mxu1 %vm1589_vm0, %v1588_v0  ;;  %1333 = vmatpush3.bf16.msra.mxu1 %v1481_v23 }
 0x14c   :  { %v701_v10 = vpop.f32.mrb[8].mxu0 }
 0x14d   :  { %v702_v12 = vadd.f32 %v701_v10, %v459_v55  ;;  %v703_v13 = vpop.f32.mrb[9].mxu0 }
 0x14e   :  { %v704_v15 = vadd.f32 %v703_v13, %v461_v56  ;;  %v705_v16 = vpop.f32.mrb[10].mxu0 }
 0x14f   :  { %v714_v17 = vadd.f32 %v710_v11, %v702_v12  ;;  %v706_v18 = vpop.f32.mrb[11].mxu0 }
 0x150   :  { %v715_v19 = vadd.f32 %v711_v14, %v704_v15 }
 0x151   :  { %v718_v20 = vmax.f32 %v714_v17, 0.0 }
 0x152   :  { %v719_v21 = vmax.f32 %v715_v19, 0.0 }
 0x153   :  { %v722_v0 = vpack.c.bf16 %v718_v20, %v718_v20 }
 0x154   :  { %v723_v22 = vpack.c.bf16 %v719_v21, %v719_v21 }
 0x156   :  { %1059 = vmatprep.mubr.bf16.mxu0 %v723_v22 }
 0x157   :  { %1060 = vmatmul.mubr.bf16.vlgmr.msra.gmra.mrb[12].mxu0 %v722_v0 }
 0x21c   :  { %v1290_v24 = vpop.f32.mrb[8].mxu1 }
 0x21d   :  { %v1291_v25 = vpop.f32.mrb[9].mxu1 }
 0x21e   :  { %v1292_v26 = vadd.f32 %v1291_v25, %v1290_v24  ;;  %v1293_v27 = vpop.f32.mrb[10].mxu1 }
 0x21f   :  { %v1294_v28 = vpop.f32.mrb[11].mxu1 }
 0x220   :  { %v1022_v32 = vadd.f32 %v1292_v26, %v1233_v29 }
 0x22a   :  { %v1312_v30 = vpop.f32.mrb[12].mxu0 }
 0x22b   :  { %v1313_v31 = vpop.f32.mrb[13].mxu0 }
 0x22c   :  { %v1314_v33 = vadd.f32 %v1313_v31, %v1312_v30  ;;  %v1315_v34 = vpop.f32.mrb[14].mxu0 }
 0x22d   :  { %v1316_v35 = vpop.f32.mrb[15].mxu0 }
 0x22e   :  { %v1062_v36 = vadd.f32 %v1314_v33, %v1022_v32 }
 0x230   :  { %v1266_v37 = vmul.f32 -1.442695, %v1062_v36 }
 0x232   :  { %1482 = vpow2.f32 %v1266_v37 }
 0x23c   :  { %v1483_v38 = vpop.eup %1482 }
 0x23d   :  { %v1070_v39 = vadd.f32 1.0, %v1483_v38 }
 0x23f   :  { %1484 = vrcp.f32 %v1070_v39 }
 0x249   :  { %v1485_v40 = vpop.eup %1484 }
 0x24a   :  { %v1073_v41 = vpack.c.bf16 %v1485_v40, %v1485_v40 }
 0x24c   :  { %1335 = vmatmul.mubr.msk.bf16.vlgmr.msra.gmra.mrb[12].mxu1 %vm1082_vm2, %v1073_v41 }
 0x31f   :  { %v1120_v42 = vpop.f32.mrb[12].mxu1 }
 0x320   :  { %v1127_v43 = vmul.f32 %v1120_v42, %v1900_v47  ;;  %v1336_v44 = vpop.f32.mrb[13].mxu1 }
 0x321   :  { %v1123_v45 = vpop.f32.mrb[14].mxu1 }
 0x322   :  { %1128 = vst [vmem:[#allocation8] sm:$0xff] %v1127_v43  ;;  %v1337_v46 = vpop.f32.mrb[15].mxu1 }
 0x323   :  { %1133 = vsyncadd [#allocation4], 64  ;;  %s1591_s9 = smov [#allocation7]  }
 0x324   :  { %s1134_s10 = sshll.u32 %s1591_s9, 4  ;;  %s1135_s10 = int_to_ptr.vmem [resolvable:$true] %s1134_s10 }
 0x325   :  { %s1530_s22 = scalar_lea.vmem %s1135_s10, 64  ;;  %s1534_s28 = scalar_lea.vmem %s1135_s10, 128 }
 0x326   :  { %p1531_p2 = scmp.ne.s32.totalorder %s1135_s10, %s1530_s22  ;;  %p1535_p3 = scmp.lt.s32.totalorder %s1135_s10, %s1135_s10 }
 0x327   :  { %p1536_p4 = scmp.lt.s32.totalorder %s1534_s28, %s1530_s22 }
 0x329   :  { %p1537_p5 = por %p1536_p4, %p1535_p3 }
 0x32b   :  { %p1538_p6 = pnand %p1537_p5, %p1531_p2 }
 0x32d   :  { %1541 = shalt.err (!%p1538_p6)
}
 0x32e   :  { %s1542_s30 = scalar_lea.hbm %s1965_s11, 64 }
 0x32f   :  { %p1543_p7 = scmp.ne.s32.totalorder %s1965_s11, %s1542_s30  ;;  %p1546_p8 = scmp.lt.u32.totalorder %s1542_s30, %s1965_s11 }
 0x331   :  { %p1548_p9 = pnand %p1546_p8, %p1543_p7 }
 0x333   :  { %1551 = shalt.err (!%p1548_p9)
}
 0x334   :  { %1140 = dma.vmem_to_hbm [thread:$0]  %s1135_s10, 64, %s1965_s11, [#allocation4], %s1583_s13, %s1583_s13, %s1584_s14  }
 0x335   :  { %1145 = vsyncadd [#allocation9], 64  ;;  %s1592_s19 = smov [#allocation8]  }
 0x336   :  { %s1146_s20 = sshll.u32 %s1592_s19, 4  ;;  %s1147_s20 = int_to_ptr.vmem [resolvable:$true] %s1146_s20 }
 0x337   :  { %s1552_s8 = scalar_lea.vmem %s1147_s20, 64  ;;  %s1556_s21 = scalar_lea.vmem %s1147_s20, 128 }
 0x338   :  { %p1553_p10 = scmp.ne.s32.totalorder %s1147_s20, %s1552_s8  ;;  %p1557_p11 = scmp.lt.s32.totalorder %s1147_s20, %s1147_s20 }
 0x339   :  { %p1558_p12 = scmp.lt.s32.totalorder %s1556_s21, %s1552_s8 }
 0x33b   :  { %p1559_p13 = por %p1558_p12, %p1557_p11 }
 0x33d   :  { %p1560_p0 = pnand %p1559_p13, %p1553_p10 }
 0x33f   :  { %1563 = shalt.err (!%p1560_p0)
}
 0x340   :  { %s1564_s23 = scalar_lea.hbm %s1966_s12, 64 }
 0x341   :  { %p1565_p1 = scmp.ne.s32.totalorder %s1966_s12, %s1564_s23  ;;  %p1568_p2 = scmp.lt.u32.totalorder %s1564_s23, %s1966_s12 }
 0x343   :  { %p1570_p3 = pnand %p1568_p2, %p1565_p1 }
 0x345   :  { %1573 = shalt.err (!%p1570_p3)
}
 0x346   :  { %1152 = dma.vmem_to_hbm [thread:$0]  %s1147_s20, 64, %s1966_s12, [#allocation9], %s1583_s13, %s1583_s13, %s1584_s14  }
 0x347   :  { %1578 = dma.done.wait [#allocation4], 128  }
 0x348   :  { %1579 = vsyncadd [#allocation4], 4294967168 }
 0x349   :  { %1580 = dma.done.wait [#allocation9], 128  }
 0x34a   :  { %1581 = vsyncadd [#allocation9], 4294967168 }
 0x34b   :  { %1159 = vsyncpa [#allocation3], 1 }
 0x34c   :  { %1160 = vsyncpa [#allocation6], 1 }
 0x34d   :  { %1161 = vsyncpa [#allocation4], 1 }
 0x34e   :  { %1162 = vsyncpa [#allocation9], 1 }

// kernel: tpu_custom_call.1
= control target key start
LH: loop header
LB: loop body
LE: loop exit
PB: predicated region body
PF: predicated region fallthrough
CT: control target
= control target key end

     0   :  { %18 = vsyncpa [#allocation3], 0  ;;  %s1954_s0 = inlined_call_operand.vmem [shape: f32[4,64], index: 0, kind: input, shape index: {}]   ;;  %s1955_s1 = inlined_call_operand.vmem [shape: f32[4,128], index: 1, kind: input, shape index: {}]   ;;  %s1956_s2 = inlined_call_operand.vmem [shape: f32[4,128], index: 2, kind: input, shape index: {}]   ;;  %s1957_s3 = inlined_call_operand.vmem [shape: f32[8,512], index: 3, kind: input, shape index: {}]   ;;  %s1958_s4 = inlined_call_operand.hbm [shape: bf16[64,128], index: 4, kind: input, shape index: {}]   ;;  %s1959_s5 = inlined_call_operand.vmem [shape: f32[1,128], index: 5, kind: input, shape index: {}]   ;;  %s1960_s6 = inlined_call_operand.vmem [shape: bf16[128,512], index: 6, kind: input, shape index: {}]   ;;  %s1961_s7 = inlined_call_operand.hbm [shape: bf16[128,512], index: 7, kind: input, shape index: {}]   ;;  %s1962_s8 = inlined_call_operand.vmem [shape: bf16[512,16], index: 8, kind: input, shape index: {}]   ;;  %s1963_s9 = inlined_call_operand.vmem [shape: f32[1,16], index: 9, kind: input, shape index: {}]   ;;  %s1964_s10 = inlined_call_operand.vmem [shape: bf16[16,128], index: 10, kind: input, shape index: {}]   ;;  %s1965_s11 = inlined_call_operand.hbm [shape: f32[4,128], index: 11, kind: output, shape index: {0}]   ;;  %s1966_s12 = inlined_call_operand.hbm [shape: f32[4,128], index: 12, kind: output, shape index: {1}]  }
   0x1   :  { %19 = vsyncpa [#allocation6], 0 }
   0x2   :  { %20 = vsyncpa [#allocation4], 0 }
   0x3   :  { %21 = vsyncpa [#allocation9], 0  ;;  %s1582_s21 = smov [#allocation2]   ;;  %s1486_s25 = scalar_lea.hbm %s1958_s4, 512 }
   0x4   :  { %s35_s22 = sshll.u32 %s1582_s21, 4  ;;  %p1487_p0 = scmp.ne.s32.totalorder %s1958_s4, %s1486_s25  ;;  %s36_s22 = int_to_ptr.vmem [resolvable:$true] %s35_s22 }
   0x5   :  { %p1490_p1 = scmp.lt.u32.totalorder %s1486_s25, %s1958_s4 }
   0x7   :  { %p1492_p2 = pnand %p1490_p1, %p1487_p0 }
   0x9   :  { %1495 = shalt.err (!%p1492_p2)
}
   0xa   :  { %s1496_s30 = scalar_lea.vmem %s36_s22, 512  ;;  %p1501_p4 = scmp.lt.s32.totalorder %s36_s22, %s36_s22 }
   0xb   :  { %p1497_p3 = scmp.ne.s32.totalorder %s36_s22, %s1496_s30  ;;  %p1502_p5 = scmp.lt.s32.totalorder %s1496_s30, %s1496_s30 }
   0xd   :  { %p1503_p6 = por %p1502_p5, %p1501_p4 }
   0xf   :  { %p1504_p7 = pnand %p1503_p6, %p1497_p3 }
  0x11   :  { %1507 = shalt.err (!%p1504_p7)
}
  0x12   :  { %s1583_s13 = smov 64   ;;  %s1584_s14 = smov 4  }
  0x13   :  { %41 = dma.hbm_to_vmem [thread:$0]  %s1958_s4, 512, %s36_s22, [#allocation3], %s1583_s13, %s1583_s13, %s1584_s14  }
  0x14   :  { %s1585_s17 = smov [#allocation5]   ;;  %s1508_s21 = scalar_lea.hbm %s1961_s7, 4096 }
  0x15   :  { %s51_s18 = sshll.u32 %s1585_s17, 4  ;;  %p1509_p8 = scmp.ne.s32.totalorder %s1961_s7, %s1508_s21  ;;  %s52_s18 = int_to_ptr.vmem [resolvable:$true] %s51_s18 }
  0x16   :  { %p1512_p9 = scmp.lt.u32.totalorder %s1508_s21, %s1961_s7 }
  0x18   :  { %p1514_p10 = pnand %p1512_p9, %p1509_p8 }
  0x1a   :  { %1517 = shalt.err (!%p1514_p10)
}
  0x1b   :  { %s1518_s27 = scalar_lea.vmem %s52_s18, 4096  ;;  %p1523_p12 = scmp.lt.s32.totalorder %s52_s18, %s52_s18 }
  0x1c   :  { %p1519_p11 = scmp.ne.s32.totalorder %s52_s18, %s1518_s27  ;;  %p1524_p13 = scmp.lt.s32.totalorder %s1518_s27, %s1518_s27 }
  0x1e   :  { %p1525_p0 = por %p1524_p13, %p1523_p12 }
  0x20   :  { %p1526_p1 = pnand %p1525_p0, %p1519_p11 }
  0x22   :  { %1529 = shalt.err (!%p1526_p1)
}
  0x23   :  { %s1586_s4 = smov 256   ;;  %s1587_s22 = smov 16  }
  0x24   :  { %57 = dma.hbm_to_vmem [thread:$0]  %s1961_s7, 4096, %s52_s18, [#allocation6], %s1586_s4, %s1586_s4, %s1587_s22  }
  0x25   :  { %1574 = dma.done.wait [#allocation3], 512  }
  0x26   :  { %1575 = vsyncadd [#allocation3], 4294966784 }
  0x27   :  { %1576 = dma.done.wait [#allocation6], 4096  }
  0x28   :  { %1577 = vsyncadd [#allocation6], 4294963200  ;;  %v1588_v0 = vmov 0.0   ;;  %vm1589_vm0 = vmmov 0   ;;  %v1590_v1 = vmov 0   ;;  %v1349_v2 = vld [vmem:[#allocation2] sm:$0xff]  }
  0x29   :  { %1320 = vmatprep.subr.bf16.mxu0 %v1588_v0  ;;  %1328 = vmatprep.mubr.msk.bf16.mxu0 %vm1589_vm0, %v1588_v0  ;;  %v1350_v3 = vld [vmem:[#allocation5 + $0x4] ss:$16 sps:$4 sm:$0xff]   ;;  %v1352_v4 = vld [vmem:[#allocation5] ss:$16 sps:$4 sm:$0xff]   ;;  %v1353_v5 = vld [vmem:[#allocation2 + $0x8] sm:$0xff]   ;;  %vm112_vm1 = vcmask 523264  }
  0x2a   :  { %416 = vmatprep.mubr.bf16.mxu1 %v1590_v1  ;;  %1321 = vmatpush3.bf16.msra.mxu0 %v1349_v2  ;;  %v1354_v6 = vld [vmem:[#allocation5 + $0x24] ss:$16 sps:$4 sm:$0xff]   ;;  %v1356_v7 = vld [vmem:[#allocation5 + $0x20] ss:$16 sps:$4 sm:$0xff]   ;;  %v1361_v12 = vld [vmem:[#allocation2 + $0x18] sm:$0xff]   ;;  %vm1082_vm2 = vcmask 130048  }
  0x2b   :  { %384 = vmatprep.subr.bf16.mxu1 %v1350_v3  ;;  %1322 = vmatprep.subr.bf16.mxu0 %v1588_v0  ;;  %v1357_v8 = vld [vmem:[#allocation2 + $0x10] sm:$0xff]   ;;  %v71_v13 = vld [vmem:[%s1954_s0] sm:$0xff]  ;;  %v1367_v14 = vld [vmem:[#allocation5 + $0xc] ss:$16 sps:$4 sm:$0xff]  }
  0x2c   :  { %385 = vmatpush1.bf16.msra.mxu1 %v1352_v4  ;;  %v1358_v9 = vld [vmem:[#allocation5 + $0x44] ss:$16 sps:$4 sm:$0xff]   ;;  %v1360_v10 = vld [vmem:[#allocation5 + $0x40] ss:$16 sps:$4 sm:$0xff]   ;;  %v72_v16 = vpack.c.bf16 %v71_v13, %v71_v13  ;;  %v1365_v18 = vld [vmem:[#allocation5 + $0x8] ss:$16 sps:$4 sm:$0xff]  }
  0x2d   :  { %386 = vmatprep.subr.bf16.mxu1 %v1354_v6  ;;  %v1362_v11 = vld [vmem:[#allocation5 + $0x64] ss:$16 sps:$4 sm:$0xff]   ;;  %v1364_v15 = vld [vmem:[#allocation5 + $0x60] ss:$16 sps:$4 sm:$0xff]   ;;  %v1373_v19 = vld [vmem:[#allocation5 + $0x2c] ss:$16 sps:$4 sm:$0xff]  }
  0x2e   :  { %1323 = vmatpush3.bf16.msra.mxu0 %v1353_v5  ;;  %v1368_v17 = vld [vmem:[#allocation5 + $0x84] ss:$16 sps:$4 sm:$0xff]   ;;  %v1370_v20 = vld [vmem:[#allocation5 + $0x80] ss:$16 sps:$4 sm:$0xff]   ;;  %v1371_v22 = vld [vmem:[#allocation5 + $0x28] ss:$16 sps:$4 sm:$0xff]  }
  0x2f   :  { %1324 = vmatprep.subr.bf16.mxu0 %v1588_v0  ;;  %v1374_v21 = vld [vmem:[#allocation5 + $0xa4] ss:$16 sps:$4 sm:$0xff]   ;;  %v1379_v23 = vld [vmem:[#allocation5 + $0x4c] ss:$16 sps:$4 sm:$0xff]   ;;  %v1376_v24 = vld [vmem:[#allocation5 + $0xa0] ss:$16 sps:$4 sm:$0xff]  }
  0x30   :  { %387 = vmatpush1.bf16.msra.mxu1 %v1356_v7  ;;  %v1380_v25 = vld [vmem:[#allocation5 + $0xc4] ss:$16 sps:$4 sm:$0xff]   ;;  %v1377_v26 = vld [vmem:[#allocation5 + $0x48] ss:$16 sps:$4 sm:$0xff]   ;;  %v1385_v27 = vld [vmem:[#allocation5 + $0x6c] ss:$16 sps:$4 sm:$0xff]  }
  0x31   :  { %388 = vmatprep.subr.bf16.mxu1 %v1358_v9  ;;  %v1382_v28 = vld [vmem:[#allocation5 + $0xc0] ss:$16 sps:$4 sm:$0xff]   ;;  %v1386_v29 = vld [vmem:[#allocation5 + $0xe4] ss:$16 sps:$4 sm:$0xff]   ;;  %v1383_v30 = vld [vmem:[#allocation5 + $0x68] ss:$16 sps:$4 sm:$0xff]  }
  0x32   :  { %1325 = vmatpush3.bf16.msra.mxu0 %v1357_v8  ;;  %v1391_v31 = vld [vmem:[#allocation5 + $0x8c] ss:$16 sps:$4 sm:$0xff]   ;;  %v1388_v32 = vld [vmem:[#allocation5 + $0xe0] ss:$16 sps:$4 sm:$0xff]   ;;  %v1394_v34 = vld [vmem:[%s1960_s6 + $0x4] ss:$16 sps:$4 sm:$0xff]  }
  0x33   :  { %1326 = vmatprep.subr.bf16.mxu0 %v1588_v0  ;;  %v190_v33 = vld [vmem:[%s1956_s2] sm:$0xff]  ;;  %v1389_v35 = vld [vmem:[#allocation5 + $0x88] ss:$16 sps:$4 sm:$0xff]   ;;  %v1397_v37 = vld [vmem:[#allocation5 + $0xac] ss:$16 sps:$4 sm:$0xff]  }
  0x34   :  { %389 = vmatpush1.bf16.msra.mxu1 %v1360_v10  ;;  %v191_v36 = vpack.c.bf16 %v190_v33, %v190_v33  ;;  %v1392_v38 = vld [vmem:[%s1960_s6] ss:$16 sps:$4 sm:$0xff]   ;;  %v1400_v39 = vld [vmem:[%s1960_s6 + $0x24] ss:$16 sps:$4 sm:$0xff]   ;;  %v1395_v40 = vld [vmem:[#allocation5 + $0xa8] ss:$16 sps:$4 sm:$0xff]  }
  0x35   :  { %390 = vmatprep.subr.bf16.mxu1 %v1362_v11  ;;  %v1403_v41 = vld [vmem:[#allocation5 + $0xcc] ss:$16 sps:$4 sm:$0xff]   ;;  %v1398_v42 = vld [vmem:[%s1960_s6 + $0x20] ss:$16 sps:$4 sm:$0xff]   ;;  %v1406_v43 = vld [vmem:[%s1960_s6 + $0x44] ss:$16 sps:$4 sm:$0xff]  }
  0x36   :  { %1327 = vmatpush3.bf16.msra.mxu0 %v1361_v12  ;;  %v1401_v44 = vld [vmem:[#allocation5 + $0xc8] ss:$16 sps:$4 sm:$0xff]   ;;  %v1409_v45 = vld [vmem:[#allocation5 + $0xec] ss:$16 sps:$4 sm:$0xff]   ;;  %v1404_v46 = vld [vmem:[%s1960_s6 + $0x40] ss:$16 sps:$4 sm:$0xff]  }
  0x37   :  { %425 = vmatprep.subr.bf16.mxu0 %v1367_v14  ;;  %v1412_v47 = vld [vmem:[%s1960_s6 + $0x64] ss:$16 sps:$4 sm:$0xff]   ;;  %v1407_v48 = vld [vmem:[#allocation5 + $0xe8] ss:$16 sps:$4 sm:$0xff]   ;;  %v1415_v49 = vld [vmem:[%s1960_s6 + $0xc] ss:$16 sps:$4 sm:$0xff]  }
  0x38   :  { %391 = vmatpush1.bf16.msra.mxu1 %v1364_v15  ;;  %v1410_v50 = vld [vmem:[%s1960_s6 + $0x60] ss:$16 sps:$4 sm:$0xff]   ;;  %v1418_v51 = vld [vmem:[%s1960_s6 + $0x84] ss:$16 sps:$4 sm:$0xff]   ;;  %v1413_v52 = vld [vmem:[%s1960_s6 + $0x8] ss:$16 sps:$4 sm:$0xff]  }
  0x39   :  { %1329 = vmatmul.mubr.msk.bf16.vlgmr.msra.gmra.mrb[0].mxu0 %vm112_vm1, %v72_v16  ;;  %392 = vmatprep.subr.bf16.mxu1 %v1368_v17  ;;  %v1416_v53 = vld [vmem:[%s1960_s6 + $0x80] ss:$16 sps:$4 sm:$0xff]   ;;  %v1421_v54 = vld [vmem:[%s1960_s6 + $0x2c] ss:$16 sps:$4 sm:$0xff]   ;;  %v1424_v55 = vld [vmem:[%s1960_s6 + $0xa4] ss:$16 sps:$4 sm:$0xff]  }
  0x3a   :  { %426 = vmatpush1.bf16.msra.mxu0 %v1365_v18  ;;  %457 = vmatprep.mubr.bf16.mxu0 %v1590_v1  ;;  %v1419_v56 = vld [vmem:[%s1960_s6 + $0x28] ss:$16 sps:$4 sm:$0xff]   ;;  %v1427_v57 = vld [vmem:[%s1960_s6 + $0x4c] ss:$16 sps:$4 sm:$0xff]   ;;  %v1422_v58 = vld [vmem:[%s1960_s6 + $0xa0] ss:$16 sps:$4 sm:$0xff]  }
  0x3b   :  { %427 = vmatprep.subr.bf16.mxu0 %v1373_v19  ;;  %v1430_v59 = vld [vmem:[%s1960_s6 + $0xc4] ss:$16 sps:$4 sm:$0xff]   ;;  %v1425_v60 = vld [vmem:[%s1960_s6 + $0x48] ss:$16 sps:$4 sm:$0xff]   ;;  %v1433_v61 = vld [vmem:[%s1960_s6 + $0x6c] ss:$16 sps:$4 sm:$0xff]  }
  0x3c   :  { %393 = vmatpush1.bf16.msra.mxu1 %v1370_v20  ;;  %v1428_v62 = vld [vmem:[%s1960_s6 + $0xc0] ss:$16 sps:$4 sm:$0xff]   ;;  %v1436_v63 = vld [vmem:[%s1960_s6 + $0xe4] ss:$16 sps:$4 sm:$0xff]   ;;  %v1439_v2 = vld [vmem:[%s1960_s6 + $0x8c] ss:$16 sps:$4 sm:$0xff]  }
  0x3d   :  { %394 = vmatprep.subr.bf16.mxu1 %v1374_v21  ;;  %v1434_v3 = vld [vmem:[%s1960_s6 + $0xe0] ss:$16 sps:$4 sm:$0xff]   ;;  %v1437_v5 = vld [vmem:[%s1960_s6 + $0x88] ss:$16 sps:$4 sm:$0xff]   ;;  %v1442_v6 = vld [vmem:[%s1960_s6 + $0xac] ss:$16 sps:$4 sm:$0xff]  }
  0x3e   :  { %428 = vmatpush1.bf16.msra.mxu0 %v1371_v22  ;;  %v156_v4 = vld [vmem:[%s1955_s1] sm:$0xff]  ;;  %v1440_v8 = vld [vmem:[%s1960_s6 + $0xa8] ss:$16 sps:$4 sm:$0xff]   ;;  %v1445_v9 = vld [vmem:[%s1960_s6 + $0xcc] ss:$16 sps:$4 sm:$0xff]  }
  0x3f   :  { %429 = vmatprep.subr.bf16.mxu0 %v1379_v23  ;;  %v157_v7 = vpack.c.bf16 %v156_v4, %v156_v4  ;;  %v1443_v10 = vld [vmem:[%s1960_s6 + $0xc8] ss:$16 sps:$4 sm:$0xff]   ;;  %v1448_v11 = vld [vmem:[%s1960_s6 + $0xec] ss:$16 sps:$4 sm:$0xff]   ;;  %v1449_v13 = vld [vmem:[%s1962_s8 + $0x40] sm:$0xff]  }
  0x40   :  { %395 = vmatpush1.bf16.msra.mxu1 %v1376_v24  ;;  %v1446_v12 = vld [vmem:[%s1960_s6 + $0xe8] ss:$16 sps:$4 sm:$0xff]   ;;  %v1450_v14 = vld [vmem:[%s1962_s8] sm:$0xff]   ;;  %v1453_v17 = vld [vmem:[%s1962_s8 + $0x50] sm:$0xff]  }
  0x41   :  { %396 = vmatprep.subr.bf16.mxu1 %v1380_v25  ;;  %v1451_v15 = vld [vmem:[%s1962_s8 + $0x48] sm:$0xff]   ;;  %v1454_v18 = vld [vmem:[%s1962_s8 + $0x10] sm:$0xff]   ;;  %v1455_v19 = vld [vmem:[%s1962_s8 + $0x58] sm:$0xff]  }
  0x42   :  { %430 = vmatpush1.bf16.msra.mxu0 %v1377_v26  ;;  %v1452_v16 = vld [vmem:[%s1962_s8 + $0x8] sm:$0xff]   ;;  %v1457_v20 = vld [vmem:[%s1962_s8 + $0xc0] sm:$0xff]   ;;  %v1456_v23 = vld [vmem:[%s1962_s8 + $0x18] sm:$0xff]  }
  0x43   :  { %431 = vmatprep.subr.bf16.mxu0 %v1385_v27  ;;  %v1459_v21 = vld [vmem:[%s1962_s8 + $0x80] sm:$0xff]   ;;  %v1461_v22 = vld [vmem:[%s1962_s8 + $0xc8] sm:$0xff]   ;;  %v1469_v33 = vld [vmem:[%s1962_s8 + $0xd8] sm:$0xff]  }
  0x44   :  { %397 = vmatpush1.bf16.msra.mxu1 %v1382_v28  ;;  %v1458_v24 = vld [vmem:[%s1962_s8 + $0x60] sm:$0xff]   ;;  %v1463_v25 = vld [vmem:[%s1962_s8 + $0x88] sm:$0xff]  }
  0x45   :  { %398 = vmatprep.subr.bf16.mxu1 %v1386_v29  ;;  %v1460_v26 = vld [vmem:[%s1962_s8 + $0x20] sm:$0xff]   ;;  %v1462_v27 = vld [vmem:[%s1962_s8 + $0x68] sm:$0xff]   ;;  %v1465_v29 = vld [vmem:[%s1962_s8 + $0xd0] sm:$0xff]  }
  0x46   :  { %432 = vmatpush1.bf16.msra.mxu0 %v1383_v30  ;;  %v1464_v28 = vld [vmem:[%s1962_s8 + $0x28] sm:$0xff]   ;;  %v1466_v30 = vld [vmem:[%s1962_s8 + $0x70] sm:$0xff]  }
  0x47   :  { %433 = vmatprep.subr.bf16.mxu0 %v1391_v31  ;;  %v1467_v31 = vld [vmem:[%s1962_s8 + $0x90] sm:$0xff]  }
  0x48   :  { %399 = vmatpush1.bf16.msra.mxu1 %v1388_v32  ;;  %v1468_v32 = vld [vmem:[%s1962_s8 + $0x30] sm:$0xff]  }
  0x49   :  { %626 = vmatprep.subr.bf16.mxu1 %v1394_v34  ;;  %v1470_v34 = vld [vmem:[%s1962_s8 + $0x78] sm:$0xff]  }
  0x4a   :  { %434 = vmatpush1.bf16.msra.mxu0 %v1389_v35  ;;  %v1471_v35 = vld [vmem:[%s1962_s8 + $0x98] sm:$0xff]  }
  0x4b   :  { %417 = vmatmul.mubr.bf16.vlgmr.msra.gmra.mrb[0].mxu1 %v191_v36  ;;  %435 = vmatprep.subr.bf16.mxu0 %v1397_v37  ;;  %v1473_v37 = vld [vmem:[%s1962_s8 + $0xe0] sm:$0xff]  }
  0x4c   :  { %627 = vmatpush1.bf16.msra.mxu1 %v1392_v38  ;;  %658 = vmatprep.mubr.bf16.mxu1 %v1590_v1  ;;  %v1474_v38 = vld [vmem:[%s1962_s8 + $0xa0] sm:$0xff]  }
  0x4d   :  { %628 = vmatprep.subr.bf16.mxu1 %v1400_v39  ;;  %v1475_v39 = vld [vmem:[%s1962_s8 + $0xe8] sm:$0xff]  }
  0x4e   :  { %436 = vmatpush1.bf16.msra.mxu0 %v1395_v40  ;;  %v1476_v40 = vld [vmem:[%s1962_s8 + $0xa8] sm:$0xff]  }
  0x4f   :  { %437 = vmatprep.subr.bf16.mxu0 %v1403_v41  ;;  %v1477_v41 = vld [vmem:[%s1962_s8 + $0xf0] sm:$0xff]  }
  0x50   :  { %629 = vmatpush1.bf16.msra.mxu1 %v1398_v42  ;;  %v1478_v42 = vld [vmem:[%s1962_s8 + $0xb0] sm:$0xff]  }
  0x51   :  { %630 = vmatprep.subr.bf16.mxu1 %v1406_v43  ;;  %v1479_v43 = vld [vmem:[%s1962_s8 + $0xf8] sm:$0xff]  }
  0x52   :  { %438 = vmatpush1.bf16.msra.mxu0 %v1401_v44  ;;  %v1480_v44 = vld [vmem:[%s1962_s8 + $0xb8] sm:$0xff]  }
  0x53   :  { %439 = vmatprep.subr.bf16.mxu0 %v1409_v45  ;;  %v1163_v45 = vld [vmem:[%s1959_s5] ss:$0 sm:$0xff] }
  0x54   :  { %631 = vmatpush1.bf16.msra.mxu1 %v1404_v46 }
  0x55   :  { %632 = vmatprep.subr.bf16.mxu1 %v1412_v47 }
  0x56   :  { %440 = vmatpush1.bf16.msra.mxu0 %v1407_v48 }
  0x57   :  { %667 = vmatprep.subr.bf16.mxu0 %v1415_v49 }
  0x58   :  { %633 = vmatpush1.bf16.msra.mxu1 %v1410_v50 }
  0x59   :  { %458 = vmatmul.mubr.bf16.vlgmr.msra.gmra.mrb[4].mxu0 %v191_v36  ;;  %634 = vmatprep.subr.bf16.mxu1 %v1418_v51  ;;  %v1472_v36 = vld [vmem:[%s1962_s8 + $0x38] sm:$0xff]  }
  0x5a   :  { %668 = vmatpush1.bf16.msra.mxu0 %v1413_v52  ;;  %699 = vmatprep.mubr.bf16.mxu0 %v1590_v1  ;;  %v1431_v1 = vld [vmem:[%s1960_s6 + $0x68] ss:$16 sps:$4 sm:$0xff]  }
  0x5b   :  { %669 = vmatprep.subr.bf16.mxu0 %v1421_v54 }
  0x5c   :  { %635 = vmatpush1.bf16.msra.mxu1 %v1416_v53 }
  0x5d   :  { %636 = vmatprep.subr.bf16.mxu1 %v1424_v55 }
  0x5e   :  { %670 = vmatpush1.bf16.msra.mxu0 %v1419_v56 }
  0x5f   :  { %671 = vmatprep.subr.bf16.mxu0 %v1427_v57 }
  0x60   :  { %637 = vmatpush1.bf16.msra.mxu1 %v1422_v58 }
  0x61   :  { %638 = vmatprep.subr.bf16.mxu1 %v1430_v59 }
  0x62   :  { %672 = vmatpush1.bf16.msra.mxu0 %v1425_v60  ;;  %v708_v60 = vld [vmem:[%s1957_s3] sm:$0xff] }
  0x63   :  { %673 = vmatprep.subr.bf16.mxu0 %v1433_v61 }
  0x64   :  { %639 = vmatpush1.bf16.msra.mxu1 %v1428_v62 }
  0x65   :  { %640 = vmatprep.subr.bf16.mxu1 %v1436_v63  ;;  %v709_v63 = vld [vmem:[%s1957_s3 + $0x8] sm:$0xff] }
  0x66   :  { %674 = vmatpush1.bf16.msra.mxu0 %v1431_v1 }
  0x67   :  { %675 = vmatprep.subr.bf16.mxu0 %v1439_v2 }
  0x68   :  { %641 = vmatpush1.bf16.msra.mxu1 %v1434_v3 }
  0x69   :  { %1274 = vmatprep.subr.bf16.mxu1 %v1449_v13 }
  0x6a   :  { %676 = vmatpush1.bf16.msra.mxu0 %v1437_v5 }
  0x6b   :  { %659 = vmatmul.mubr.bf16.vlgmr.msra.gmra.mrb[4].mxu1 %v157_v7  ;;  %677 = vmatprep.subr.bf16.mxu0 %v1442_v6 }
  0x6c   :  { %1275 = vmatpush3.bf16.msra.mxu1 %v1450_v14  ;;  %v711_v14 = vld [vmem:[%s1957_s3 + $0x18] sm:$0xff] }
  0x6d   :  { %1276 = vmatprep.subr.bf16.mxu1 %v1451_v15 }
  0x6e   :  { %678 = vmatpush1.bf16.msra.mxu0 %v1440_v8 }
  0x6f   :  { %679 = vmatprep.subr.bf16.mxu0 %v1445_v9 }
  0x70   :  { %1277 = vmatpush3.bf16.msra.mxu1 %v1452_v16 }
  0x71   :  { %1278 = vmatprep.subr.bf16.mxu1 %v1453_v17 }
  0x72   :  { %680 = vmatpush1.bf16.msra.mxu0 %v1443_v10 }
  0x73   :  { %681 = vmatprep.subr.bf16.mxu0 %v1448_v11  ;;  %v710_v11 = vld [vmem:[%s1957_s3 + $0x10] sm:$0xff] }
  0x74   :  { %1279 = vmatpush3.bf16.msra.mxu1 %v1454_v18 }
  0x75   :  { %1280 = vmatprep.subr.bf16.mxu1 %v1455_v19 }
  0x76   :  { %682 = vmatpush1.bf16.msra.mxu0 %v1446_v12 }
  0x77   :  { %1296 = vmatprep.subr.bf16.mxu0 %v1457_v20 }
  0x78   :  { %1281 = vmatpush3.bf16.msra.mxu1 %v1456_v23  ;;  %v1481_v23 = vld [vmem:[%s1964_s10] sm:$0xff]  }
  0x79   :  { %700 = vmatmul.mubr.bf16.vlgmr.msra.gmra.mrb[8].mxu0 %v157_v7  ;;  %1282 = vmatprep.subr.bf16.mxu1 %v1458_v24 }
  0x7a   :  { %1297 = vmatpush3.bf16.msra.mxu0 %v1459_v21 }
  0x7b   :  { %1298 = vmatprep.subr.bf16.mxu0 %v1461_v22 }
  0x7c   :  { %1283 = vmatpush3.bf16.msra.mxu1 %v1460_v26 }
  0x7d   :  { %1284 = vmatprep.subr.bf16.mxu1 %v1462_v27 }
  0x7e   :  { %1299 = vmatpush3.bf16.msra.mxu0 %v1463_v25 }
  0x7f   :  { %1300 = vmatprep.subr.bf16.mxu0 %v1465_v29  ;;  %v1233_v29 = vld [vmem:[%s1963_s9] ss:$0 sm:$0xff] }
  0x80   :  { %1285 = vmatpush3.bf16.msra.mxu1 %v1464_v28 }
  0x81   :  { %1286 = vmatprep.subr.bf16.mxu1 %v1466_v30 }
  0x82   :  { %1301 = vmatpush3.bf16.msra.mxu0 %v1467_v31 }
  0x83   :  { %1302 = vmatprep.subr.bf16.mxu0 %v1469_v33 }
  0x84   :  { %1287 = vmatpush3.bf16.msra.mxu1 %v1468_v32 }
  0x85   :  { %1288 = vmatprep.subr.bf16.mxu1 %v1470_v34 }
  0x86   :  { %1303 = vmatpush3.bf16.msra.mxu0 %v1471_v35 }
  0x87   :  { %1304 = vmatprep.subr.bf16.mxu0 %v1473_v37 }
  0x88   :  { %1289 = vmatpush3.bf16.msra.mxu1 %v1472_v36 }
  0x89   :  { %1332 = vmatprep.subr.bf16.mxu1 %v1588_v0 }
  0x8a   :  { %1305 = vmatpush3.bf16.msra.mxu0 %v1474_v38 }
  0x8b   :  { %1306 = vmatprep.subr.bf16.mxu0 %v1475_v39 }
  0x8e   :  { %1307 = vmatpush3.bf16.msra.mxu0 %v1476_v40 }
  0x8f   :  { %1308 = vmatprep.subr.bf16.mxu0 %v1477_v41 }
  0x92   :  { %1309 = vmatpush3.bf16.msra.mxu0 %v1478_v42 }
  0x93   :  { %1310 = vmatprep.subr.bf16.mxu0 %v1479_v43 }
  0x96   :  { %1311 = vmatpush3.bf16.msra.mxu0 %v1480_v44 }
 0x10c   :  { %v150_v46 = vpop.f32.mrb[0].mxu0 }
 0x10d   :  { %v1900_v47 = vadd.f32 %v1163_v45, %v150_v46  ;;  %v1330_v48 = vpop.f32.mrb[1].mxu0 }
 0x10e   :  { %v153_v49 = vpop.f32.mrb[2].mxu0 }
 0x10f   :  { %1126 = vst [vmem:[#allocation7] sm:$0xff] %v1900_v47  ;;  %v1331_v50 = vpop.f32.mrb[3].mxu0 }
 0x11e   :  { %v418_v51 = vpop.f32.mrb[0].mxu1 }
 0x11f   :  { %v420_v52 = vpop.f32.mrb[1].mxu1 }
 0x120   :  { %v422_v53 = vpop.f32.mrb[2].mxu1 }
 0x121   :  { %v423_v54 = vpop.f32.mrb[3].mxu1 }
 0x12c   :  { %v459_v55 = vpop.f32.mrb[4].mxu0 }
 0x12d   :  { %v461_v56 = vpop.f32.mrb[5].mxu0 }
 0x12e   :  { %v463_v57 = vpop.f32.mrb[6].mxu0 }
 0x12f   :  { %v464_v58 = vpop.f32.mrb[7].mxu0 }
 0x13e   :  { %v660_v59 = vpop.f32.mrb[4].mxu1 }
 0x13f   :  { %v661_v61 = vadd.f32 %v660_v59, %v418_v51  ;;  %v662_v62 = vpop.f32.mrb[5].mxu1 }
 0x140   :  { %v663_v1 = vadd.f32 %v662_v62, %v420_v52  ;;  %v664_v2 = vpop.f32.mrb[6].mxu1 }
 0x141   :  { %v712_v3 = vadd.f32 %v708_v60, %v661_v61  ;;  %v665_v4 = vpop.f32.mrb[7].mxu1 }
 0x142   :  { %v713_v5 = vadd.f32 %v709_v63, %v663_v1 }
 0x143   :  { %v716_v6 = vmax.f32 %v712_v3, 0.0 }
 0x144   :  { %v717_v7 = vmax.f32 %v713_v5, 0.0 }
 0x145   :  { %v720_v9 = vpack.c.bf16 %v716_v6, %v716_v6 }
 0x146   :  { %v721_v8 = vpack.c.bf16 %v717_v7, %v717_v7 }
 0x148   :  { %1019 = vmatprep.mubr.bf16.mxu1 %v721_v8 }
 0x149   :  { %1020 = vmatmul.mubr.bf16.vlgmr.msra.gmra.mrb[8].mxu1 %v720_v9 }
 0x14a   :  { %1334 = vmatprep.mubr.msk.bf16.mxu1 %vm1589_vm0, %v1588_v0  ;;  %1333 = vmatpush3.bf16.msra.mxu1 %v1481_v23 }
 0x14c   :  { %v701_v10 = vpop.f32.mrb[8].mxu0 }
 0x14d   :  { %v702_v12 = vadd.f32 %v701_v10, %v459_v55  ;;  %v703_v13 = vpop.f32.mrb[9].mxu0 }
 0x14e   :  { %v704_v15 = vadd.f32 %v703_v13, %v461_v56  ;;  %v705_v16 = vpop.f32.mrb[10].mxu0 }
 0x14f   :  { %v714_v17 = vadd.f32 %v710_v11, %v702_v12  ;;  %v706_v18 = vpop.f32.mrb[11].mxu0 }
 0x150   :  { %v715_v19 = vadd.f32 %v711_v14, %v704_v15 }
 0x151   :  { %v718_v20 = vmax.f32 %v714_v17, 0.0 }
 0x152   :  { %v719_v21 = vmax.f32 %v715_v19, 0.0 }
 0x153   :  { %v722_v0 = vpack.c.bf16 %v718_v20, %v718_v20 }
 0x154   :  { %v723_v22 = vpack.c.bf16 %v719_v21, %v719_v21 }
 0x156   :  { %1059 = vmatprep.mubr.bf16.mxu0 %v723_v22 }
 0x157   :  { %1060 = vmatmul.mubr.bf16.vlgmr.msra.gmra.mrb[12].mxu0 %v722_v0 }
 0x21c   :  { %v1290_v24 = vpop.f32.mrb[8].mxu1 }
 0x21d   :  { %v1291_v25 = vpop.f32.mrb[9].mxu1 }
 0x21e   :  { %v1292_v26 = vadd.f32 %v1291_v25, %v1290_v24  ;;  %v1293_v27 = vpop.f32.mrb[10].mxu1 }
 0x21f   :  { %v1294_v28 = vpop.f32.mrb[11].mxu1 }
 0x220   :  { %v1022_v32 = vadd.f32 %v1292_v26, %v1233_v29 }
 0x22a   :  { %v1312_v30 = vpop.f32.mrb[12].mxu0 }
 0x22b   :  { %v1313_v31 = vpop.f32.mrb[13].mxu0 }
 0x22c   :  { %v1314_v33 = vadd.f32 %v1313_v31, %v1312_v30  ;;  %v1315_v34 = vpop.f32.mrb[14].mxu0 }
 0x22d   :  { %v1316_v35 = vpop.f32.mrb[15].mxu0 }
 0x22e   :  { %v1062_v36 = vadd.f32 %v1314_v33, %v1022_v32 }
 0x230   :  { %v1266_v37 = vmul.f32 -1.442695, %v1062_v36 }
 0x232   :  { %1482 = vpow2.f32 %v1266_v37 }
 0x23c   :  { %v1483_v38 = vpop.eup %1482 }
 0x23d   :  { %v1070_v39 = vadd.f32 1.0, %v1483_v38 }
 0x23f   :  { %1484 = vrcp.f32 %v1070_v39 }
 0x249   :  { %v1485_v40 = vpop.eup %1484 }
 0x24a   :  { %v1073_v41 = vpack.c.bf16 %v1485_v40, %v1485_v40 }
 0x24c   :  { %1335 = vmatmul.mubr.msk.bf16.vlgmr.msra.gmra.mrb[12].mxu1 %vm1082_vm2, %v1073_v41 }
 0x31f   :  { %v1120_v42 = vpop.f32.mrb[12].mxu1 }
 0x320   :  { %v1127_v43 = vmul.f32 %v1120_v42, %v1900_v47  ;;  %v1336_v44 = vpop.f32.mrb[13].mxu1 }
 0x321   :  { %v1123_v45 = vpop.f32.mrb[14].mxu1 }
 0x322   :  { %1128 = vst [vmem:[#allocation8] sm:$0xff] %v1127_v43  ;;  %v1337_v46 = vpop.f32.mrb[15].mxu1 }
 0x323   :  { %1133 = vsyncadd [#allocation4], 64  ;;  %s1591_s9 = smov [#allocation7]  }
 0x324   :  { %s1134_s10 = sshll.u32 %s1591_s9, 4  ;;  %s1135_s10 = int_to_ptr.vmem [resolvable:$true] %s1134_s10 }
 0x325   :  { %s1530_s22 = scalar_lea.vmem %s1135_s10, 64  ;;  %s1534_s28 = scalar_lea.vmem %s1135_s10, 128 }
 0x326   :  { %p1531_p2 = scmp.ne.s32.totalorder %s1135_s10, %s1530_s22  ;;  %p1535_p3 = scmp.lt.s32.totalorder %s1135_s10, %s1135_s10 }
 0x327   :  { %p1536_p4 = scmp.lt.s32.totalorder %s1534_s28, %s1530_s22 }
 0x329   :  { %p1537_p5 = por %p1536_p4, %p1535_p3 }
 0x32b   :  { %p1538_p6 = pnand %p1537_p5, %p1531_p2 }
 0x32d   :  { %1541 = shalt.err (!%p1538_p6)
}
 0x32e   :  { %s1542_s30 = scalar_lea.hbm %s1965_s11, 64 }
 0x32f   :  { %p1543_p7 = scmp.ne.s32.totalorder %s1965_s11, %s1542_s30  ;;  %p1546_p8 = scmp.lt.u32.totalorder %s1542_s30, %s1965_s11 }
 0x331   :  { %p1548_p9 = pnand %p1546_p8, %p1543_p7 }
 0x333   :  { %1551 = shalt.err (!%p1548_p9)
}
 0x334   :  { %1140 = dma.vmem_to_hbm [thread:$0]  %s1135_s10, 64, %s1965_s11, [#allocation4], %s1583_s13, %s1583_s13, %s1584_s14  }
 0x335   :  { %1145 = vsyncadd [#allocation9], 64  ;;  %s1592_s19 = smov [#allocation8]  }
 0x336   :  { %s1146_s20 = sshll.u32 %s1592_s19, 4  ;;  %s1147_s20 = int_to_ptr.vmem [resolvable:$true] %s1146_s20 }
 0x337   :  { %s1552_s8 = scalar_lea.vmem %s1147_s20, 64  ;;  %s1556_s21 = scalar_lea.vmem %s1147_s20, 128 }
 0x338   :  { %p1553_p10 = scmp.ne.s32.totalorder %s1147_s20, %s1552_s8  ;;  %p1557_p11 = scmp.lt.s32.totalorder %s1147_s20, %s1147_s20 }
 0x339   :  { %p1558_p12 = scmp.lt.s32.totalorder %s1556_s21, %s1552_s8 }
 0x33b   :  { %p1559_p13 = por %p1558_p12, %p1557_p11 }
 0x33d   :  { %p1560_p0 = pnand %p1559_p13, %p1553_p10 }
 0x33f   :  { %1563 = shalt.err (!%p1560_p0)
}
 0x340   :  { %s1564_s23 = scalar_lea.hbm %s1966_s12, 64 }
 0x341   :  { %p1565_p1 = scmp.ne.s32.totalorder %s1966_s12, %s1564_s23  ;;  %p1568_p2 = scmp.lt.u32.totalorder %s1564_s23, %s1966_s12 }
 0x343   :  { %p1570_p3 = pnand %p1568_p2, %p1565_p1 }
 0x345   :  { %1573 = shalt.err (!%p1570_p3)
}
 0x346   :  { %1152 = dma.vmem_to_hbm [thread:$0]  %s1147_s20, 64, %s1966_s12, [#allocation9], %s1583_s13, %s1583_s13, %s1584_s14  }
 0x347   :  { %1578 = dma.done.wait [#allocation4], 128  }
 0x348   :  { %1579 = vsyncadd [#allocation4], 4294967168 }
 0x349   :  { %1580 = dma.done.wait [#allocation9], 128  }
 0x34a   :  { %1581 = vsyncadd [#allocation9], 4294967168 }
 0x34b   :  { %1159 = vsyncpa [#allocation3], 1 }
 0x34c   :  { %1160 = vsyncpa [#allocation6], 1 }
 0x34d   :  { %1161 = vsyncpa [#allocation4], 1 }
 0x34e   :  { %1162 = vsyncpa [#allocation9], 1 }

</bundles_post_ra>
